<compile_context>
chip_gen: v7x
topology: tpu7x:2x2x1
jax: 0.10.0
libtpu: 0.0.40
codegen_flags: <defaults>
</compile_context>

<pallas_src>
import functools

import jax
import jax.numpy as jnp
from jax.experimental import pallas as pl
from jax.experimental.pallas import tpu as pltpu


def _round_up(v, m):
    return ((v + m - 1) // m) * m


def _mlp_kernel(x_ref, w0_ref, b0_ref, w1_ref, b1_ref, w2_ref, b2_ref,
                w3_ref, b3_ref, o_ref):
    """Fused 4-layer MLP for one batch tile. All weights resident in VMEM.

    Matmuls take bf16 operands (MXU-native) with f32 accumulation; bias adds,
    ReLU and the final sigmoid are computed in f32.
    """
    h = jnp.dot(x_ref[...], w0_ref[...], preferred_element_type=jnp.float32)
    h = jnp.maximum(h + b0_ref[...], 0.0)

    h = jnp.dot(h.astype(jnp.bfloat16), w1_ref[...],
                preferred_element_type=jnp.float32)
    h = jnp.maximum(h + b1_ref[...], 0.0)

    h = jnp.dot(h.astype(jnp.bfloat16), w2_ref[...],
                preferred_element_type=jnp.float32)
    h = jnp.maximum(h + b2_ref[...], 0.0)

    y = jnp.dot(h.astype(jnp.bfloat16), w3_ref[...],
                preferred_element_type=jnp.float32)
    o_ref[...] = jax.nn.sigmoid(y + b3_ref[...]).astype(o_ref.dtype)


@functools.partial(jax.jit, static_argnames=("batch_tile",))
def nnet_forward(x, params, *, batch_tile=512):
    """x: [B, n_in] float32.  params: list of (W[in,out] bf16, b[1,out] f32)."""
    B, n_in = x.shape
    (w0, b0), (w1, b1), (w2, b2), (w3, b3) = params
    h0, h1, h2 = w0.shape[1], w1.shape[1], w2.shape[1]   # 128, 256, 128
    n_out = w3.shape[1]

    # Lane-dense padding of the narrow input/output feature dims.
    n_in_pad = _round_up(n_in, 128)
    n_out_pad = _round_up(n_out, 128)

    # Batch tiling: round B up to 128 rows, then split as evenly as possible
    # into tiles <= batch_tile, preferring >= 2 grid steps (v7x two
    # TensorCores) when there are at least 2x128 rows of work.
    b_pad = _round_up(B, 128)
    n128 = b_pad // 128
    want_tiles = max(pl.cdiv(b_pad, batch_tile), 2 if n128 >= 2 else 1)
    batch_tile = pl.cdiv(n128, want_tiles) * 128
    b_pad = _round_up(b_pad, batch_tile)
    grid = (b_pad // batch_tile,)

    # Pad operands (zeros in padded rows/cols contribute nothing; padded
    # output columns become sigmoid(0)=0.5 and are sliced off below).
    x_p = jnp.pad(x.astype(jnp.bfloat16),
                  ((0, b_pad - B), (0, n_in_pad - n_in)))
    w0_p = jnp.pad(w0, ((0, n_in_pad - n_in), (0, 0)))
    w3_p = jnp.pad(w3, ((0, 0), (0, n_out_pad - n_out)))
    b3_p = jnp.pad(b3, ((0, 0), (0, n_out_pad - n_out)))

    def full_spec(arr):
        return pl.BlockSpec(arr.shape, lambda i: (0, 0))

    in_specs = [
        pl.BlockSpec((batch_tile, n_in_pad), lambda i: (i, 0)),
        full_spec(w0_p), full_spec(b0),
        full_spec(w1), full_spec(b1),
        full_spec(w2), full_spec(b2),
        full_spec(w3_p), full_spec(b3_p),
    ]
    out_spec = pl.BlockSpec((batch_tile, n_out_pad), lambda i: (i, 0))

    weight_bytes = sum(int(a.size) * a.dtype.itemsize
                       for a in (w0_p, b0, w1, b1, w2, b2, w3_p, b3_p))
    flops = 2 * b_pad * (n_in_pad * h0 + h0 * h1 + h1 * h2 + h2 * n_out_pad)
    bytes_accessed = (b_pad * n_in_pad * 2          # bf16 input
                      + b_pad * n_out_pad * 4       # f32 output
                      + weight_bytes)
    cost = pl.CostEstimate(flops=flops,
                           transcendentals=b_pad * n_out_pad,
                           bytes_accessed=bytes_accessed)

    out_padded = pl.pallas_call(
        _mlp_kernel,
        out_shape=jax.ShapeDtypeStruct((b_pad, n_out_pad), jnp.float32),
        grid_spec=pltpu.PrefetchScalarGridSpec(
            num_scalar_prefetch=0,
            grid=grid,
            in_specs=in_specs,
            out_specs=out_spec,
        ),
        compiler_params=pltpu.CompilerParams(
            dimension_semantics=("parallel",)),
        cost_estimate=cost,
    )(x_p, w0_p, b0, w1, b1, w2, b2, w3_p, b3_p)

    return out_padded[:B, :n_out]


def make_params(key, n_in, n_out, hlayers=(128, 256, 128)):
    """Deterministic synthetic parameters with the same shapes as NNet.

    Weights stored [in, out] in bf16 (MXU-native), biases [1, out] in f32.
    Init mirrors torch.nn.Linear's default U(-1/sqrt(fan_in), 1/sqrt(fan_in)).
    """
    dims = [n_in] + list(hlayers) + [n_out]
    params = []
    for i in range(len(dims) - 1):
        key, kw, kb = jax.random.split(key, 3)
        fan_in = dims[i]
        bound = 1.0 / jnp.sqrt(fan_in)
        w = jax.random.uniform(kw, (dims[i], dims[i + 1]), jnp.float32,
                               minval=-bound, maxval=bound)
        b = jax.random.uniform(kb, (1, dims[i + 1]), jnp.float32,
                               minval=-bound, maxval=bound)
        params.append((w.astype(jnp.bfloat16), b))
    return params


def nnet_reference(x, params):
    """Pure-JAX f32 reference of the same forward pass (same bf16 weights)."""
    h = x
    for w, b in params[:-1]:
        h = jnp.maximum(h @ w.astype(jnp.float32) + b, 0.0)
    w, b = params[-1]
    return jax.nn.sigmoid(h @ w.astype(jnp.float32) + b)


if __name__ == "__main__":
    key = jax.random.PRNGKey(0)
    # B=500 exercises the batch-padding path and a 2-step grid (v7x megacore).
    B, n_in, n_out = 500, 32, 16

    key, kx = jax.random.split(key)
    x = jax.random.normal(kx, (B, n_in), jnp.float32)
    params = make_params(key, n_in, n_out)

    out = jax.block_until_ready(nnet_forward(x, params))

    ref = nnet_reference(x, params)
    assert out.shape == (B, n_out)
    max_err = float(jnp.max(jnp.abs(out - ref)))
    assert jnp.allclose(out, ref, atol=2e-2, rtol=2e-2), (
        f"mismatch vs reference, max abs err = {max_err}")

    print("KERNEL_OK")
</pallas_src>

<mosaic_0001>
module attributes {stable_mosaic.version = 11 : i64} {
  func.func @_mlp_kernel(%arg0: i32, %arg1: memref<256x128xbf16, #tpu.memory_space<vmem>>, %arg2: memref<128x128xbf16, #tpu.memory_space<vmem>>, %arg3: memref<1x128xf32, #tpu.memory_space<vmem>>, %arg4: memref<128x256xbf16, #tpu.memory_space<vmem>>, %arg5: memref<1x256xf32, #tpu.memory_space<vmem>>, %arg6: memref<256x128xbf16, #tpu.memory_space<vmem>>, %arg7: memref<1x128xf32, #tpu.memory_space<vmem>>, %arg8: memref<128x128xbf16, #tpu.memory_space<vmem>>, %arg9: memref<1x128xf32, #tpu.memory_space<vmem>>, %arg10: memref<256x128xf32, #tpu.memory_space<vmem>>) attributes {dimension_semantics = [#tpu.dimension_semantics<parallel>], iteration_bounds = array<i64: 2>, scalar_prefetch = 0 : i64, scratch_operands = 0 : i64, tpu.core_type = #tpu.core_type<tc>, window_params = [{transform_indices = @transform_0, window_bounds = array<i64: 256, 128>}, {pipeline_mode = #tpu.pipeline_mode<synchronous>, transform_indices = @transform_1, window_bounds = array<i64: 128, 128>}, {pipeline_mode = #tpu.pipeline_mode<synchronous>, transform_indices = @transform_2, window_bounds = array<i64: 1, 128>}, {pipeline_mode = #tpu.pipeline_mode<synchronous>, transform_indices = @transform_3, window_bounds = array<i64: 128, 256>}, {pipeline_mode = #tpu.pipeline_mode<synchronous>, transform_indices = @transform_4, window_bounds = array<i64: 1, 256>}, {pipeline_mode = #tpu.pipeline_mode<synchronous>, transform_indices = @transform_5, window_bounds = array<i64: 256, 128>}, {pipeline_mode = #tpu.pipeline_mode<synchronous>, transform_indices = @transform_6, window_bounds = array<i64: 1, 128>}, {pipeline_mode = #tpu.pipeline_mode<synchronous>, transform_indices = @transform_7, window_bounds = array<i64: 128, 128>}, {pipeline_mode = #tpu.pipeline_mode<synchronous>, transform_indices = @transform_8, window_bounds = array<i64: 1, 128>}, {transform_indices = @transform_9, window_bounds = array<i64: 256, 128>}]} {
    %c0 = arith.constant 0 : index
    %c0_0 = arith.constant 0 : index
    %0 = vector.load %arg1[%c0, %c0_0] : memref<256x128xbf16, #tpu.memory_space<vmem>>, vector<256x128xbf16>
    %c0_1 = arith.constant 0 : index
    %c0_2 = arith.constant 0 : index
    %1 = vector.load %arg2[%c0_1, %c0_2] : memref<128x128xbf16, #tpu.memory_space<vmem>>, vector<128x128xbf16>
    %cst = arith.constant dense<0.000000e+00> : vector<256x128xf32>
    %2 = tpu.matmul %0, %1, %cst {dimension_numbers = #tpu.dot_dimension_numbers<[1], [0], [0], [1], [0, 0, 1, 1], [], []>} : vector<256x128xbf16>, vector<128x128xbf16>, vector<256x128xf32> -> vector<256x128xf32>
    %c0_3 = arith.constant 0 : index
    %c0_4 = arith.constant 0 : index
    %3 = vector.load %arg3[%c0_3, %c0_4] : memref<1x128xf32, #tpu.memory_space<vmem>>, vector<1x128xf32>
    %4 = vector.broadcast %3 : vector<1x128xf32> to vector<256x128xf32>
    %5 = arith.addf %2, %4 : vector<256x128xf32>
    %cst_5 = arith.constant 0.000000e+00 : f32
    %6 = vector.broadcast %cst_5 : f32 to vector<256x128xf32>
    %7 = arith.maximumf %5, %6 : vector<256x128xf32>
    %8 = arith.truncf %7 : vector<256x128xf32> to vector<256x128xbf16>
    %c0_6 = arith.constant 0 : index
    %c0_7 = arith.constant 0 : index
    %9 = vector.load %arg4[%c0_6, %c0_7] : memref<128x256xbf16, #tpu.memory_space<vmem>>, vector<128x256xbf16>
    %cst_8 = arith.constant dense<0.000000e+00> : vector<256x256xf32>
    %10 = tpu.matmul %8, %9, %cst_8 {dimension_numbers = #tpu.dot_dimension_numbers<[1], [0], [0], [1], [0, 0, 1, 1], [], []>} : vector<256x128xbf16>, vector<128x256xbf16>, vector<256x256xf32> -> vector<256x256xf32>
    %c0_9 = arith.constant 0 : index
    %c0_10 = arith.constant 0 : index
    %11 = vector.load %arg5[%c0_9, %c0_10] : memref<1x256xf32, #tpu.memory_space<vmem>>, vector<1x256xf32>
    %12 = vector.broadcast %11 : vector<1x256xf32> to vector<256x256xf32>
    %13 = arith.addf %10, %12 : vector<256x256xf32>
    %cst_11 = arith.constant 0.000000e+00 : f32
    %14 = vector.broadcast %cst_11 : f32 to vector<256x256xf32>
    %15 = arith.maximumf %13, %14 : vector<256x256xf32>
    %16 = arith.truncf %15 : vector<256x256xf32> to vector<256x256xbf16>
    %c0_12 = arith.constant 0 : index
    %c0_13 = arith.constant 0 : index
    %17 = vector.load %arg6[%c0_12, %c0_13] : memref<256x128xbf16, #tpu.memory_space<vmem>>, vector<256x128xbf16>
    %cst_14 = arith.constant dense<0.000000e+00> : vector<256x128xf32>
    %18 = tpu.matmul %16, %17, %cst_14 {dimension_numbers = #tpu.dot_dimension_numbers<[1], [0], [0], [1], [0, 0, 1, 1], [], []>} : vector<256x256xbf16>, vector<256x128xbf16>, vector<256x128xf32> -> vector<256x128xf32>
    %c0_15 = arith.constant 0 : index
    %c0_16 = arith.constant 0 : index
    %19 = vector.load %arg7[%c0_15, %c0_16] : memref<1x128xf32, #tpu.memory_space<vmem>>, vector<1x128xf32>
    %20 = vector.broadcast %19 : vector<1x128xf32> to vector<256x128xf32>
    %21 = arith.addf %18, %20 : vector<256x128xf32>
    %cst_17 = arith.constant 0.000000e+00 : f32
    %22 = vector.broadcast %cst_17 : f32 to vector<256x128xf32>
    %23 = arith.maximumf %21, %22 : vector<256x128xf32>
    %24 = arith.truncf %23 : vector<256x128xf32> to vector<256x128xbf16>
    %c0_18 = arith.constant 0 : index
    %c0_19 = arith.constant 0 : index
    %25 = vector.load %arg8[%c0_18, %c0_19] : memref<128x128xbf16, #tpu.memory_space<vmem>>, vector<128x128xbf16>
    %cst_20 = arith.constant dense<0.000000e+00> : vector<256x128xf32>
    %26 = tpu.matmul %24, %25, %cst_20 {dimension_numbers = #tpu.dot_dimension_numbers<[1], [0], [0], [1], [0, 0, 1, 1], [], []>} : vector<256x128xbf16>, vector<128x128xbf16>, vector<256x128xf32> -> vector<256x128xf32>
    %c0_21 = arith.constant 0 : index
    %c0_22 = arith.constant 0 : index
    %27 = vector.load %arg9[%c0_21, %c0_22] : memref<1x128xf32, #tpu.memory_space<vmem>>, vector<1x128xf32>
    %28 = vector.broadcast %27 : vector<1x128xf32> to vector<256x128xf32>
    %29 = arith.addf %26, %28 : vector<256x128xf32>
    %30 = arith.negf %29 : vector<256x128xf32>
    %31 = math.exp %30 : vector<256x128xf32>
    %cst_23 = arith.constant 1.000000e+00 : f32
    %32 = vector.broadcast %cst_23 : f32 to vector<256x128xf32>
    %33 = arith.addf %32, %31 : vector<256x128xf32>
    %34 = arith.divf %32, %33 : vector<256x128xf32>
    %c0_24 = arith.constant 0 : index
    %c0_25 = arith.constant 0 : index
    %35 = vector.load %arg10[%c0_24, %c0_25] : memref<256x128xf32, #tpu.memory_space<vmem>>, vector<256x128xf32>
    tpu.vector_store %arg10[%c0_24, %c0_25], %34 {strides = array<i32>} : memref<256x128xf32, #tpu.memory_space<vmem>>, vector<256x128xf32>,
    return
  }
  func.func @transform_0(%arg0: i32) -> (i32, i32) {
    %c0_i32 = arith.constant 0 : i32
    %c0_i32_0 = arith.constant 0 : i32
    return %arg0, %c0_i32 : i32, i32
  }
  func.func @transform_1(%arg0: i32) -> (i32, i32) {
    %c0_i32 = arith.constant 0 : i32
    %c0_i32_0 = arith.constant 0 : i32
    %c0_i32_1 = arith.constant 0 : i32
    return %c0_i32, %c0_i32_0 : i32, i32
  }
  func.func @transform_2(%arg0: i32) -> (i32, i32) {
    %c0_i32 = arith.constant 0 : i32
    %c0_i32_0 = arith.constant 0 : i32
    %c0_i32_1 = arith.constant 0 : i32
    return %c0_i32, %c0_i32_0 : i32, i32
  }
  func.func @transform_3(%arg0: i32) -> (i32, i32) {
    %c0_i32 = arith.constant 0 : i32
    %c0_i32_0 = arith.constant 0 : i32
    %c0_i32_1 = arith.constant 0 : i32
    return %c0_i32, %c0_i32_0 : i32, i32
  }
  func.func @transform_4(%arg0: i32) -> (i32, i32) {
    %c0_i32 = arith.constant 0 : i32
    %c0_i32_0 = arith.constant 0 : i32
    %c0_i32_1 = arith.constant 0 : i32
    return %c0_i32, %c0_i32_0 : i32, i32
  }
  func.func @transform_5(%arg0: i32) -> (i32, i32) {
    %c0_i32 = arith.constant 0 : i32
    %c0_i32_0 = arith.constant 0 : i32
    %c0_i32_1 = arith.constant 0 : i32
    return %c0_i32, %c0_i32_0 : i32, i32
  }
  func.func @transform_6(%arg0: i32) -> (i32, i32) {
    %c0_i32 = arith.constant 0 : i32
    %c0_i32_0 = arith.constant 0 : i32
    %c0_i32_1 = arith.constant 0 : i32
    return %c0_i32, %c0_i32_0 : i32, i32
  }
  func.func @transform_7(%arg0: i32) -> (i32, i32) {
    %c0_i32 = arith.constant 0 : i32
    %c0_i32_0 = arith.constant 0 : i32
    %c0_i32_1 = arith.constant 0 : i32
    return %c0_i32, %c0_i32_0 : i32, i32
  }
  func.func @transform_8(%arg0: i32) -> (i32, i32) {
    %c0_i32 = arith.constant 0 : i32
    %c0_i32_0 = arith.constant 0 : i32
    %c0_i32_1 = arith.constant 0 : i32
    return %c0_i32, %c0_i32_0 : i32, i32
  }
  func.func @transform_9(%arg0: i32) -> (i32, i32) {
    %c0_i32 = arith.constant 0 : i32
    %c0_i32_0 = arith.constant 0 : i32
    return %arg0, %c0_i32 : i32, i32
  }
}

</mosaic_0001>

<bundles_post_ra>
// kernel: nnet_forward.1
= control target key start
LH: loop header
LB: loop body
LE: loop exit
PB: predicated region body
PF: predicated region fallthrough
CT: control target
= control target key end

     0   :  { %s2632_s30 = smov 0   ;;  %s3050_s0 = inlined_call_operand.vmem [shape: bf16[512,128], index: 0, kind: input, shape index: {}]   ;;  %s3051_s1 = inlined_call_operand.vmem [shape: bf16[128,128], index: 1, kind: input, shape index: {}]   ;;  %s3052_s2 = inlined_call_operand.vmem [shape: f32[1,128], index: 2, kind: input, shape index: {}]   ;;  %s3053_s3 = inlined_call_operand.vmem [shape: bf16[128,256], index: 3, kind: input, shape index: {}]   ;;  %s3054_s4 = inlined_call_operand.vmem [shape: f32[1,256], index: 4, kind: input, shape index: {}]   ;;  %s3055_s5 = inlined_call_operand.vmem [shape: bf16[256,128], index: 5, kind: input, shape index: {}]   ;;  %s3056_s6 = inlined_call_operand.vmem [shape: f32[1,128], index: 6, kind: input, shape index: {}]   ;;  %s3057_s7 = inlined_call_operand.vmem [shape: bf16[128,128], index: 7, kind: input, shape index: {}]   ;;  %s3058_s8 = inlined_call_operand.vmem [shape: f32[1,128], index: 8, kind: input, shape index: {}]   ;;  %s3059_s9 = inlined_call_operand.vmem [shape: f32[512,128], index: 9, kind: output, shape index: {}]  }
   0x1 LB: > { %s1998_s10 = sadd.s32 4294967295, %s2579_s30   ;;  %p2002_p0 = scmp.ge.s32.totalorder %s2579_s30, 1  ;;  %s2579_s30 = sphi %s2632_s30, %s19_s30  }
   0x2   : > { %p288_p1 = scmp.lt.s32.totalorder %s2579_s30, 3 }
   0x4   : > { %p289_p2 = pnand %p2002_p0, %p288_p1 }
   0x5   : > { %v2373_v0 = vld [vmem:[%s3051_s1] sm:$0xff] (!%p289_p2)   ;;  %s2003_s13 = sshll.u32 (!%p289_p2), %s1998_s10, 5  ;;  %v2374_v1 = vld [vmem:[%s3051_s1 + $0x8] sm:$0xff] (!%p289_p2)   ;;  %v2375_v2 = vld [vmem:[%s3051_s1 + $0x10] sm:$0xff] (!%p289_p2)   ;;  %v2581_v40 = vmov (!%p289_p2), 0  }
   0x6   : > { %292 = sbr.rel (%p289_p2) target bundleno = 1070 (0x42e), region = 56  ;;  %p325_p3 = scmp.lt.s32.totalorder (!%p289_p2), %s2003_s13, 63  ;;  %2268 = vmatprep.subr.bf16.mxu0 (!%p289_p2), %v2373_v0  ;;  %v2376_v3 = vld [vmem:[%s3051_s1 + $0x18] sm:$0xff] (!%p289_p2)   ;;  %v2377_v5 = vld [vmem:[%s3051_s1 + $0x20] sm:$0xff] (!%p289_p2)   ;;  %v2378_v6 = vld [vmem:[%s3051_s1 + $0x28] sm:$0xff] (!%p289_p2)   ;;  %885 = vmatprep.mubr.bf16.mxu1 (!%p289_p2), %v2581_v40 }
   0x7   : > { %2269 = vmatpush3.bf16.msra.mxu0 (!%p289_p2), %v2373_v0  ;;  %v2379_v7 = vld [vmem:[%s3051_s1 + $0x30] sm:$0xff] (!%p289_p2)   ;;  %v2380_v8 = vld [vmem:[%s3051_s1 + $0x38] sm:$0xff] (!%p289_p2)   ;;  %v2397_v9 = vld [vmem:[%s3053_s3 + $0x4] ss:$8 sps:$4 sm:$0xff] (!%p289_p2)  }
   0x8   : > { %2270 = vmatprep.subr.bf16.mxu0 (!%p289_p2), %v2374_v1  ;;  %v2399_v10 = vld [vmem:[%s3053_s3] ss:$8 sps:$4 sm:$0xff] (!%p289_p2)   ;;  %853 = vmatprep.subr.bf16.mxu1 (!%p289_p2), %v2397_v9  ;;  %v2400_v11 = vld [vmem:[%s3053_s3 + $0x14] ss:$8 sps:$4 sm:$0xff] (!%p289_p2)   ;;  %v2402_v12 = vld [vmem:[%s3053_s3 + $0x10] ss:$8 sps:$4 sm:$0xff] (!%p289_p2)  }
   0x9   : > { %854 = vmatpush1.bf16.msra.mxu1 (!%p289_p2), %v2399_v10  ;;  %v2403_v13 = vld [vmem:[%s3053_s3 + $0x24] ss:$8 sps:$4 sm:$0xff] (!%p289_p2)   ;;  %v2405_v16 = vld [vmem:[%s3053_s3 + $0x20] ss:$8 sps:$4 sm:$0xff] (!%p289_p2)   ;;  %v2406_v17 = vld [vmem:[%s3053_s3 + $0x34] ss:$8 sps:$4 sm:$0xff] (!%p289_p2)  }
   0xa   : > { %855 = vmatprep.subr.bf16.mxu1 (!%p289_p2), %v2400_v11  ;;  %v2408_v18 = vld [vmem:[%s3053_s3 + $0x30] ss:$8 sps:$4 sm:$0xff] (!%p289_p2)   ;;  %v2409_v19 = vld [vmem:[%s3053_s3 + $0x44] ss:$8 sps:$4 sm:$0xff] (!%p289_p2)   ;;  %v2411_v22 = vld [vmem:[%s3053_s3 + $0x40] ss:$8 sps:$4 sm:$0xff] (!%p289_p2)  }
   0xb   : > { %2271 = vmatpush3.bf16.msra.mxu0 (!%p289_p2), %v2374_v1  ;;  %v2412_v23 = vld [vmem:[%s3053_s3 + $0x54] ss:$8 sps:$4 sm:$0xff] (!%p289_p2)   ;;  %v2414_v24 = vld [vmem:[%s3053_s3 + $0x50] ss:$8 sps:$4 sm:$0xff] (!%p289_p2)   ;;  %v2415_v36 = vld [vmem:[%s3053_s3 + $0x64] ss:$8 sps:$4 sm:$0xff] (!%p289_p2)  }
   0xc   : > { %2272 = vmatprep.subr.bf16.mxu0 (!%p289_p2), %v2375_v2  ;;  %v2417_v37 = vld [vmem:[%s3053_s3 + $0x60] ss:$8 sps:$4 sm:$0xff] (!%p289_p2)   ;;  %v2418_v38 = vld [vmem:[%s3053_s3 + $0x74] ss:$8 sps:$4 sm:$0xff] (!%p289_p2)   ;;  %v2420_v39 = vld [vmem:[%s3053_s3 + $0x70] ss:$8 sps:$4 sm:$0xff] (!%p289_p2)  }
   0xd   : > { %s3061_s13 = smov (!%p325_p3, %s2003_s13), 63  ;;  %856 = vmatpush1.bf16.msra.mxu1 %v2402_v12  ;;  %v2740_v41 = vld [vmem:[%s3052_s2] ss:$0 sm:$0xff]  ;;  %v2423_v49 = vld [vmem:[%s3055_s5 + $0x48] sm:$0xff]   ;;  %v2425_v58 = vld [vmem:[%s3055_s5 + $0x50] sm:$0xff]  }
   0xe   : > { %s2004_s18 = sshll.u32 %s3061_s13, 2  ;;  %857 = vmatprep.subr.bf16.mxu1 %v2403_v13  ;;  %v2421_v47 = vld [vmem:[%s3055_s5 + $0x40] sm:$0xff]   ;;  %v2424_v55 = vld [vmem:[%s3055_s5 + $0x8] sm:$0xff]   ;;  %v2426_v0 = vld [vmem:[%s3055_s5 + $0x10] sm:$0xff]   ;;  %s2006_s27 = sshll.u32 %s3061_s13, 3 }
   0xf   : > { %s2655_s21 = scalar_lea.vmem %s3050_s0, %s2004_s18  ;;  %2273 = vmatpush3.bf16.msra.mxu0 %v2375_v2  ;;  %v2422_v48 = vld [vmem:[%s3055_s5] sm:$0xff]   ;;  %v2428_v10 = vld [vmem:[%s3055_s5 + $0x18] sm:$0xff]   ;;  %s2989_s29 = scalar_lea.vmem %s3059_s9, %s2006_s27 }
  0x10   : > { %v2381_v4 = vld [vmem:[%s2655_s21] sm:$0xff]   ;;  %2274 = vmatprep.subr.bf16.mxu0 %v2376_v3  ;;  %v2382_v14 = vld [vmem:[%s2655_s21 + $0x8] sm:$0xff]   ;;  %v2383_v15 = vld [vmem:[%s2655_s21 + $0x10] sm:$0xff]  }
  0x11   : > { %2284 = vmatprep.mubr.bf16.mxu0 %v2381_v4  ;;  %858 = vmatpush1.bf16.msra.mxu1 %v2405_v16  ;;  %v2384_v20 = vld [vmem:[%s2655_s21 + $0x18] sm:$0xff]   ;;  %v2385_v21 = vld [vmem:[%s2655_s21 + $0x20] sm:$0xff]   ;;  %v2386_v25 = vld [vmem:[%s2655_s21 + $0x28] sm:$0xff]  }
  0x12   : > { %859 = vmatprep.subr.bf16.mxu1 %v2406_v17  ;;  %v2387_v26 = vld [vmem:[%s2655_s21 + $0x30] sm:$0xff]   ;;  %v2388_v27 = vld [vmem:[%s2655_s21 + $0x38] sm:$0xff]   ;;  %v2389_v28 = vld [vmem:[%s2655_s21 + $0x40] sm:$0xff]  }
  0x13   : > { %2275 = vmatpush3.bf16.msra.mxu0 %v2376_v3  ;;  %v2390_v29 = vld [vmem:[%s2655_s21 + $0x48] sm:$0xff]   ;;  %v2391_v30 = vld [vmem:[%s2655_s21 + $0x50] sm:$0xff]   ;;  %v2392_v31 = vld [vmem:[%s2655_s21 + $0x58] sm:$0xff]  }
  0x14   : > { %2276 = vmatprep.subr.bf16.mxu0 %v2377_v5  ;;  %v2393_v32 = vld [vmem:[%s2655_s21 + $0x60] sm:$0xff]   ;;  %v2394_v33 = vld [vmem:[%s2655_s21 + $0x68] sm:$0xff]   ;;  %v2395_v34 = vld [vmem:[%s2655_s21 + $0x70] sm:$0xff]  }
  0x15   : > { %860 = vmatpush1.bf16.msra.mxu1 %v2408_v18  ;;  %v2396_v35 = vld [vmem:[%s2655_s21 + $0x78] sm:$0xff]   ;;  %v2429_v12 = vld [vmem:[%s3055_s5 + $0x60] sm:$0xff]  }
  0x16   : > { %861 = vmatprep.subr.bf16.mxu1 %v2409_v19  ;;  %v2427_v3 = vld [vmem:[%s3055_s5 + $0x58] sm:$0xff]   ;;  %v2430_v18 = vld [vmem:[%s3055_s5 + $0x20] sm:$0xff]  }
  0x17   : > { %2277 = vmatpush3.bf16.msra.mxu0 %v2377_v5 }
  0x18   : > { %2278 = vmatprep.subr.bf16.mxu0 %v2378_v6 }
  0x19   : > { %862 = vmatpush1.bf16.msra.mxu1 %v2411_v22 }
  0x1a   : > { %863 = vmatprep.subr.bf16.mxu1 %v2412_v23 }
  0x1b   : > { %2279 = vmatpush3.bf16.msra.mxu0 %v2378_v6 }
  0x1c   : > { %2280 = vmatprep.subr.bf16.mxu0 %v2379_v7 }
  0x1d   : > { %864 = vmatpush1.bf16.msra.mxu1 %v2414_v24 }
  0x1e   : > { %865 = vmatprep.subr.bf16.mxu1 %v2415_v36  ;;  %v2434_v36 = vld [vmem:[%s3055_s5 + $0x30] sm:$0xff]  }
  0x1f   : > { %2281 = vmatpush3.bf16.msra.mxu0 %v2379_v7 }
  0x20   : > { %2282 = vmatprep.subr.bf16.mxu0 %v2380_v8 }
  0x21   : > { %866 = vmatpush1.bf16.msra.mxu1 %v2417_v37 }
  0x22   : > { %867 = vmatprep.subr.bf16.mxu1 %v2418_v38 }
  0x23   : > { %2283 = vmatpush3.bf16.msra.mxu0 %v2380_v8 }
  0x24   : > { %2132 = vmatprep.subr.bf16.mxu0 %v2421_v47 }
  0x25   : > { %868 = vmatpush1.bf16.msra.mxu1 %v2420_v39 }
  0x26   : > { %2285 = vmatmul.mubr.bf16.vlgmr.msra.gmra.mrb[0].mxu0 %v2382_v14 }
  0x27   : > { %2288 = vmatprep.mubr.bf16.mxu0 %v2383_v15  ;;  %2133 = vmatpush3.bf16.msra.mxu0 %v2422_v48 }
  0x28   : > { %2134 = vmatprep.subr.bf16.mxu0 %v2423_v49 }
  0x2b   : > { %2135 = vmatpush3.bf16.msra.mxu0 %v2424_v55 }
  0x2c   : > { %2136 = vmatprep.subr.bf16.mxu0 %v2425_v58 }
  0x2e   : > { %2289 = vmatmul.mubr.bf16.gmra.mrb[4].mxu0 %v2384_v20 }
  0x2f   : > { %2292 = vmatprep.mubr.bf16.mxu0 %v2385_v21  ;;  %2137 = vmatpush3.bf16.msra.mxu0 %v2426_v0  ;;  %v2431_v21 = vld [vmem:[%s3055_s5 + $0x68] sm:$0xff]  }
  0x30   : > { %2138 = vmatprep.subr.bf16.mxu0 %v2427_v3 }
  0x33   : > { %2139 = vmatpush3.bf16.msra.mxu0 %v2428_v10 }
  0x34   : > { %2140 = vmatprep.subr.bf16.mxu0 %v2429_v12 }
  0x36   : > { %2293 = vmatmul.mubr.bf16.gmra.mrb[8].mxu0 %v2386_v25 }
  0x37   : > { %2296 = vmatprep.mubr.bf16.mxu0 %v2387_v26  ;;  %2141 = vmatpush3.bf16.msra.mxu0 %v2430_v18 }
  0x38   : > { %2142 = vmatprep.subr.bf16.mxu0 %v2431_v21 }
  0x3e   : > { %2297 = vmatmul.mubr.bf16.gmra.mrb[12].mxu0 %v2388_v27 }
  0x3f   : > { %2300 = vmatprep.mubr.bf16.mxu0 %v2389_v28  ;;  %v2432_v28 = vld [vmem:[%s3055_s5 + $0x28] sm:$0xff]  }
  0x40   : > { %2143 = vmatpush3.bf16.msra.mxu0 %v2432_v28 }
  0x46   : > { %2301 = vmatmul.mubr.bf16.gmra.mrb[16].mxu0 %v2390_v29 }
  0x47   : > { %2304 = vmatprep.mubr.bf16.mxu0 %v2391_v30  ;;  %v2433_v30 = vld [vmem:[%s3055_s5 + $0x70] sm:$0xff]  }
  0x48   : > { %2144 = vmatprep.subr.bf16.mxu0 %v2433_v30 }
  0x49   : > { %2145 = vmatpush3.bf16.msra.mxu0 %v2434_v36 }
  0x4e   : > { %2305 = vmatmul.mubr.bf16.gmra.mrb[20].mxu0 %v2392_v31 }
  0x4f   : > { %2308 = vmatprep.mubr.bf16.mxu0 %v2393_v32 }
  0x56   : > { %2309 = vmatmul.mubr.bf16.gmra.mrb[24].mxu0 %v2394_v33 }
  0x57   : > { %2312 = vmatprep.mubr.bf16.mxu0 %v2395_v34 }
  0x5e   : > { %2313 = vmatmul.mubr.bf16.gmra.mrb[28].mxu0 %v2396_v35 }
  0xf9   : > { %v2286_v42 = vpop.f32.mrb[0].mxu0 }
  0xfa   : > { %v579_v43 = vadd.f32 %v2286_v42, %v2740_v41  ;;  %v570_v44 = vpop.f32.mrb[1].mxu0 }
  0xfb   : > { %v571_v45 = vadd.f32 %v2740_v41, %v570_v44  ;;  %v2287_v46 = vpop.f32.mrb[2].mxu0 }
  0xfc   : > { %v582_v50 = vadd.f32 %v2287_v46, %v2740_v41  ;;  %v573_v51 = vpop.f32.mrb[3].mxu0  ;;  %v699_v53 = vmax.f32 %v579_v43, 0.0 }
  0xfd   : > { %v574_v52 = vadd.f32 %v2740_v41, %v573_v51  ;;  %v697_v56 = vmax.f32 %v571_v45, 0.0 }
  0xfe   : > { %v700_v54 = vmax.f32 %v582_v50, 0.0 }
  0xff   : > { %v698_v57 = vmax.f32 %v574_v52, 0.0 }
 0x100   : > { %v730_v59 = vpack.c.bf16 %v700_v54, %v699_v53 }
 0x101   : > { %v729_v60 = vpack.c.bf16 %v698_v57, %v697_v56  ;;  %v2290_v61 = vpop.f32.mrb[4].mxu0 }
 0x102   : > { %v595_v62 = vadd.f32 %v2290_v61, %v2740_v41  ;;  %v586_v63 = vpop.f32.mrb[5].mxu0 }
 0x103   : > { %886 = vmatmul.mubr.bf16.vlgmr.msra.gmra.mrb[0].mxu1 %v729_v60  ;;  %v587_v1 = vadd.f32 %v2740_v41, %v586_v63  ;;  %v2291_v2 = vpop.f32.mrb[6].mxu0 }
 0x104   : > { %v703_v4 = vmax.f32 %v595_v62, 0.0  ;;  %v598_v5 = vadd.f32 %v2291_v2, %v2740_v41  ;;  %v589_v6 = vpop.f32.mrb[7].mxu0  ;;  %895 = vmatprep.mubr.bf16.mxu1 %v2581_v40 }
 0x105   : > { %v701_v7 = vmax.f32 %v587_v1, 0.0  ;;  %v590_v8 = vadd.f32 %v2740_v41, %v589_v6 }
 0x106   : > { %v704_v9 = vmax.f32 %v598_v5, 0.0 }
 0x107   : > { %v702_v11 = vmax.f32 %v590_v8, 0.0 }
 0x108   : > { %v732_v13 = vpack.c.bf16 %v704_v9, %v703_v4 }
 0x109   : > { %v731_v14 = vpack.c.bf16 %v702_v11, %v701_v7  ;;  %v2294_v15 = vpop.f32.mrb[8].mxu0 }
 0x10a   : > { %v611_v16 = vadd.f32 %v2294_v15, %v2740_v41  ;;  %v602_v17 = vpop.f32.mrb[9].mxu0 }
 0x10b   : > { %896 = vmatmul.mubr.bf16.gmra.mrb[4].mxu1 %v730_v59  ;;  %v603_v19 = vadd.f32 %v2740_v41, %v602_v17  ;;  %v2295_v20 = vpop.f32.mrb[10].mxu0 }
 0x10c   : > { %905 = vmatprep.mubr.bf16.mxu1 %v2581_v40  ;;  %v707_v22 = vmax.f32 %v611_v16, 0.0  ;;  %v614_v23 = vadd.f32 %v2295_v20, %v2740_v41  ;;  %v605_v24 = vpop.f32.mrb[11].mxu0 }
 0x10d   : > { %v705_v25 = vmax.f32 %v603_v19, 0.0  ;;  %v606_v26 = vadd.f32 %v2740_v41, %v605_v24 }
 0x10e   : > { %v708_v27 = vmax.f32 %v614_v23, 0.0 }
 0x10f   : > { %v706_v29 = vmax.f32 %v606_v26, 0.0 }
 0x110   : > { %v734_v31 = vpack.c.bf16 %v708_v27, %v707_v22 }
 0x111   : > { %v733_v32 = vpack.c.bf16 %v706_v29, %v705_v25  ;;  %v2298_v33 = vpop.f32.mrb[12].mxu0 }
 0x112   : > { %v627_v34 = vadd.f32 %v2298_v33, %v2740_v41  ;;  %v618_v35 = vpop.f32.mrb[13].mxu0 }
 0x113   : > { %906 = vmatmul.mubr.bf16.gmra.mrb[8].mxu1 %v731_v14  ;;  %v619_v37 = vadd.f32 %v2740_v41, %v618_v35  ;;  %v2299_v38 = vpop.f32.mrb[14].mxu0 }
 0x114   : > { %915 = vmatprep.mubr.bf16.mxu1 %v2581_v40  ;;  %v711_v39 = vmax.f32 %v627_v34, 0.0  ;;  %v630_v42 = vadd.f32 %v2299_v38, %v2740_v41  ;;  %v621_v43 = vpop.f32.mrb[15].mxu0 }
 0x115   : > { %v709_v44 = vmax.f32 %v619_v37, 0.0  ;;  %v622_v45 = vadd.f32 %v2740_v41, %v621_v43 }
 0x116   : > { %v712_v46 = vmax.f32 %v630_v42, 0.0 }
 0x117   : > { %v710_v47 = vmax.f32 %v622_v45, 0.0  ;;  %v763_v45 = vlaneseq }
 0x118   : > { %v2803_v48 = vpack.c.bf16 %v712_v46, %v711_v39 }
 0x119   : > { %v735_v49 = vpack.c.bf16 %v710_v47, %v709_v44  ;;  %v2302_v50 = vpop.f32.mrb[16].mxu0  ;;  %v2436_v44 = vld [vmem:[%s3055_s5 + $0x38] sm:$0xff]   ;;  %v764_v46 = vshrl.u32 %v763_v45, 7 }
 0x11a   : > { %v643_v51 = vadd.f32 %v2302_v50, %v2740_v41  ;;  %v634_v52 = vpop.f32.mrb[17].mxu0 }
 0x11b   : > { %916 = vmatmul.mubr.bf16.gmra.mrb[12].mxu1 %v732_v13  ;;  %v635_v53 = vadd.f32 %v2740_v41, %v634_v52  ;;  %v2303_v54 = vpop.f32.mrb[18].mxu0  ;;  %v765_v47 = vsub.s32 0, %v764_v46 }
 0x11c   : > { %925 = vmatprep.mubr.bf16.mxu1 %v2581_v40  ;;  %v715_v55 = vmax.f32 %v643_v51, 0.0  ;;  %v646_v56 = vadd.f32 %v2303_v54, %v2740_v41  ;;  %v637_v57 = vpop.f32.mrb[19].mxu0 }
 0x11d   : > { %v713_v58 = vmax.f32 %v635_v53, 0.0  ;;  %v638_v59 = vadd.f32 %v2740_v41, %v637_v57 }
 0x11e   : > { %v716_v60 = vmax.f32 %v646_v56, 0.0 }
 0x11f   : > { %v714_v61 = vmax.f32 %v638_v59, 0.0  ;;  %v2438_v59 = vld [vmem:[%s3057_s7 + $0x8] sm:$0xff]  }
 0x120   : > { %v738_v62 = vpack.c.bf16 %v716_v60, %v715_v55 }
 0x121   : > { %v737_v63 = vpack.c.bf16 %v714_v61, %v713_v58  ;;  %v2306_v0 = vpop.f32.mrb[20].mxu0  ;;  %v2437_v58 = vld [vmem:[%s3057_s7] sm:$0xff]  }
 0x122   : > { %v659_v1 = vadd.f32 %v2306_v0, %v2740_v41  ;;  %v650_v2 = vpop.f32.mrb[21].mxu0  ;;  %2316 = vmatprep.subr.bf16.mxu1 %v2437_v58 }
 0x123   : > { %926 = vmatmul.mubr.bf16.gmra.mrb[16].mxu1 %v733_v32  ;;  %v651_v3 = vadd.f32 %v2740_v41, %v650_v2  ;;  %v2307_v4 = vpop.f32.mrb[22].mxu0  ;;  %v2439_v2 = vld [vmem:[%s3057_s7 + $0x10] sm:$0xff]  }
 0x124   : > { %935 = vmatprep.mubr.bf16.mxu1 %v2581_v40  ;;  %v719_v5 = vmax.f32 %v659_v1, 0.0  ;;  %v662_v6 = vadd.f32 %v2307_v4, %v2740_v41  ;;  %v653_v7 = vpop.f32.mrb[23].mxu0  ;;  %2317 = vmatpush3.bf16.msra.mxu1 %v2437_v58 }
 0x125   : > { %v717_v8 = vmax.f32 %v651_v3, 0.0  ;;  %v654_v9 = vadd.f32 %v2740_v41, %v653_v7  ;;  %2318 = vmatprep.subr.bf16.mxu1 %v2438_v59 }
 0x126   : > { %v720_v10 = vmax.f32 %v662_v6, 0.0 }
 0x127   : > { %v718_v11 = vmax.f32 %v654_v9, 0.0 }
 0x128   : > { %v740_v12 = vpack.c.bf16 %v720_v10, %v719_v5  ;;  %2319 = vmatpush3.bf16.msra.mxu1 %v2438_v59 }
 0x129   : > { %v739_v13 = vpack.c.bf16 %v718_v11, %v717_v8  ;;  %v2310_v14 = vpop.f32.mrb[24].mxu0  ;;  %2320 = vmatprep.subr.bf16.mxu1 %v2439_v2  ;;  %v2440_v11 = vld [vmem:[%s3057_s7 + $0x18] sm:$0xff]  }
 0x12a   : > { %v675_v15 = vadd.f32 %v2310_v14, %v2740_v41  ;;  %v666_v16 = vpop.f32.mrb[25].mxu0 }
 0x12b   : > { %936 = vmatmul.mubr.bf16.gmra.mrb[20].mxu1 %v734_v31  ;;  %v667_v17 = vadd.f32 %v2740_v41, %v666_v16  ;;  %v2311_v18 = vpop.f32.mrb[26].mxu0 }
 0x12c   : > { %945 = vmatprep.mubr.bf16.mxu1 %v2581_v40  ;;  %v723_v19 = vmax.f32 %v675_v15, 0.0  ;;  %v678_v20 = vadd.f32 %v2311_v18, %v2740_v41  ;;  %v669_v21 = vpop.f32.mrb[27].mxu0  ;;  %2321 = vmatpush3.bf16.msra.mxu1 %v2439_v2 }
 0x12d   : > { %v721_v22 = vmax.f32 %v667_v17, 0.0  ;;  %v670_v23 = vadd.f32 %v2740_v41, %v669_v21  ;;  %2322 = vmatprep.subr.bf16.mxu1 %v2440_v11 }
 0x12e   : > { %v724_v24 = vmax.f32 %v678_v20, 0.0 }
 0x12f   : > { %v722_v25 = vmax.f32 %v670_v23, 0.0 }
 0x130   : > { %v742_v26 = vpack.c.bf16 %v724_v24, %v723_v19  ;;  %2323 = vmatpush3.bf16.msra.mxu1 %v2440_v11 }
 0x131   : > { %v741_v27 = vpack.c.bf16 %v722_v25, %v721_v22  ;;  %v2314_v28 = vpop.f32.mrb[28].mxu0 }
 0x132   : > { %v691_v29 = vadd.f32 %v2314_v28, %v2740_v41  ;;  %v682_v30 = vpop.f32.mrb[29].mxu0 }
 0x133   : > { %946 = vmatmul.mubr.bf16.gmra.mrb[24].mxu1 %v735_v49  ;;  %v683_v31 = vadd.f32 %v2740_v41, %v682_v30  ;;  %v2315_v32 = vpop.f32.mrb[30].mxu0  ;;  %v769_v49 = vsub.s32 1, %v764_v46 }
 0x134   : > { %955 = vmatprep.mubr.bf16.mxu1 %v2581_v40  ;;  %v727_v33 = vmax.f32 %v691_v29, 0.0  ;;  %v694_v34 = vadd.f32 %v2315_v32, %v2740_v41  ;;  %v685_v35 = vpop.f32.mrb[31].mxu0 }
 0x135   : > { %v725_v36 = vmax.f32 %v683_v31, 0.0  ;;  %v686_v37 = vadd.f32 %v2740_v41, %v685_v35  ;;  %v2435_v41 = vld [vmem:[%s3055_s5 + $0x78] sm:$0xff]  }
 0x136   : > { %v728_v38 = vmax.f32 %v694_v34, 0.0  ;;  %2146 = vmatprep.subr.bf16.mxu0 %v2435_v41 }
 0x137   : > { %v726_v39 = vmax.f32 %v686_v37, 0.0  ;;  %2147 = vmatpush3.bf16.msra.mxu0 %v2436_v44 }
 0x138   : > { %v744_v42 = vpack.c.bf16 %v728_v38, %v727_v33 }
 0x139   : > { %v743_v43 = vpack.c.bf16 %v726_v39, %v725_v36 }
 0x13b   : > { %956 = vmatmul.mubr.bf16.gmra.mrb[28].mxu1 %v2803_v48  ;;  %v761_v48 = vld [vmem:[%s3054_s4] sm:$0x3] }
 0x13c   : > { %965 = vmatprep.mubr.bf16.mxu1 %v2581_v40  ;;  %v2843_v50 = vrot.slane %v761_v48, %v765_v47  ;;  %v2845_v51 = vrot.slane %v761_v48, %v769_v49 }
 0x143   : > { %966 = vmatmul.mubr.bf16.gmra.mrb[32].mxu1 %v737_v63 }
 0x144   : > { %975 = vmatprep.mubr.bf16.mxu1 %v2581_v40 }
 0x14b   : > { %976 = vmatmul.mubr.bf16.gmra.mrb[36].mxu1 %v738_v62 }
 0x14c   : > { %985 = vmatprep.mubr.bf16.mxu1 %v2581_v40 }
 0x153   : > { %986 = vmatmul.mubr.bf16.gmra.mrb[40].mxu1 %v739_v13 }
 0x154   : > { %995 = vmatprep.mubr.bf16.mxu1 %v2581_v40 }
 0x15b   : > { %996 = vmatmul.mubr.bf16.gmra.mrb[44].mxu1 %v740_v12 }
 0x15c   : > { %1005 = vmatprep.mubr.bf16.mxu1 %v2581_v40 }
 0x163   : > { %1006 = vmatmul.mubr.bf16.gmra.mrb[48].mxu1 %v741_v27 }
 0x164   : > { %1015 = vmatprep.mubr.bf16.mxu1 %v2581_v40 }
 0x16b   : > { %1016 = vmatmul.mubr.bf16.gmra.mrb[52].mxu1 %v742_v26 }
 0x16c   : > { %1025 = vmatprep.mubr.bf16.mxu1 %v2581_v40 }
 0x173   : > { %1026 = vmatmul.mubr.bf16.gmra.mrb[56].mxu1 %v743_v43 }
 0x174   : > { %1035 = vmatprep.mubr.bf16.mxu1 %v2581_v40 }
 0x17b   : > { %1036 = vmatmul.mubr.bf16.gmra.mrb[60].mxu1 %v744_v42 }
 0x1d6   : > { %v887_v52 = vpop.f32.mrb[0].mxu1 }
 0x1d7   : > { %v888_v53 = vadd.f32 %v887_v52, %v2843_v50  ;;  %v889_v54 = vpop.f32.mrb[1].mxu1 }
 0x1d8   : > { %v890_v55 = vadd.f32 %v889_v54, %v2845_v51  ;;  %v891_v40 = vpop.f32.mrb[2].mxu1 }
 0x1d9   : > { %v892_v56 = vadd.f32 %v891_v40, %v2843_v50  ;;  %v893_v57 = vpop.f32.mrb[3].mxu1  ;;  %v1046_v61 = vmax.f32 %v888_v53, 0.0 }
 0x1da   : > { %v894_v60 = vadd.f32 %v893_v57, %v2845_v51  ;;  %v1047_v63 = vmax.f32 %v890_v55, 0.0 }
 0x1db   : > { %v1048_v62 = vmax.f32 %v892_v56, 0.0 }
 0x1dc   : > { %v1049_v0 = vmax.f32 %v894_v60, 0.0 }
 0x1dd   : > { %v1110_v1 = vpack.c.bf16 %v1048_v62, %v1046_v61 }
 0x1de   : > { %v1111_v3 = vpack.c.bf16 %v1049_v0, %v1047_v63  ;;  %v897_v4 = vpop.f32.mrb[4].mxu1 }
 0x1df   : > { %v898_v5 = vadd.f32 %v897_v4, %v2843_v50  ;;  %v899_v6 = vpop.f32.mrb[5].mxu1 }
 0x1e0   : > { %v900_v7 = vadd.f32 %v899_v6, %v2845_v51  ;;  %v901_v8 = vpop.f32.mrb[6].mxu1  ;;  %1309 = vmatprep.mubr.bf16.mxu0 %v1111_v3 }
 0x1e1   : > { %v902_v9 = vadd.f32 %v901_v8, %v2843_v50  ;;  %v903_v10 = vpop.f32.mrb[7].mxu1  ;;  %1310 = vmatmul.mubr.bf16.vlgmr.msra.gmra.mrb[32].mxu0 %v1110_v1  ;;  %v1050_v13 = vmax.f32 %v898_v5, 0.0 }
 0x1e2   : > { %v904_v12 = vadd.f32 %v903_v10, %v2845_v51  ;;  %v1051_v15 = vmax.f32 %v900_v7, 0.0 }
 0x1e3   : > { %v1052_v14 = vmax.f32 %v902_v9, 0.0 }
 0x1e4   : > { %v1053_v16 = vmax.f32 %v904_v12, 0.0 }
 0x1e5   : > { %v1112_v17 = vpack.c.bf16 %v1052_v14, %v1050_v13 }
 0x1e6   : > { %v1113_v18 = vpack.c.bf16 %v1053_v16, %v1051_v15  ;;  %v907_v19 = vpop.f32.mrb[8].mxu1 }
 0x1e7   : > { %v908_v20 = vadd.f32 %v907_v19, %v2843_v50  ;;  %v909_v21 = vpop.f32.mrb[9].mxu1 }
 0x1e8   : > { %v910_v22 = vadd.f32 %v909_v21, %v2845_v51  ;;  %v911_v23 = vpop.f32.mrb[10].mxu1  ;;  %1317 = vmatprep.mubr.bf16.mxu0 %v1113_v18 }
 0x1e9   : > { %v912_v24 = vadd.f32 %v911_v23, %v2843_v50  ;;  %v913_v25 = vpop.f32.mrb[11].mxu1  ;;  %1318 = vmatmul.mubr.bf16.gmra.mrb[36].mxu0 %v1112_v17  ;;  %v1054_v27 = vmax.f32 %v908_v20, 0.0 }
 0x1ea   : > { %v914_v26 = vadd.f32 %v913_v25, %v2845_v51  ;;  %v1055_v29 = vmax.f32 %v910_v22, 0.0 }
 0x1eb   : > { %v1056_v28 = vmax.f32 %v912_v24, 0.0 }
 0x1ec   : > { %v1057_v30 = vmax.f32 %v914_v26, 0.0 }
 0x1ed   : > { %v1114_v31 = vpack.c.bf16 %v1056_v28, %v1054_v27 }
 0x1ee   : > { %v1115_v32 = vpack.c.bf16 %v1057_v30, %v1055_v29  ;;  %v917_v33 = vpop.f32.mrb[12].mxu1 }
 0x1ef   : > { %v918_v34 = vadd.f32 %v917_v33, %v2843_v50  ;;  %v919_v35 = vpop.f32.mrb[13].mxu1 }
 0x1f0   : > { %v920_v36 = vadd.f32 %v919_v35, %v2845_v51  ;;  %v921_v37 = vpop.f32.mrb[14].mxu1  ;;  %1325 = vmatprep.mubr.bf16.mxu0 %v1115_v32 }
 0x1f1   : > { %v922_v38 = vadd.f32 %v921_v37, %v2843_v50  ;;  %v923_v39 = vpop.f32.mrb[15].mxu1  ;;  %1326 = vmatmul.mubr.bf16.gmra.mrb[40].mxu0 %v1114_v31  ;;  %v1058_v43 = vmax.f32 %v918_v34, 0.0 }
 0x1f2   : > { %v924_v42 = vadd.f32 %v923_v39, %v2845_v51  ;;  %v1059_v44 = vmax.f32 %v920_v36, 0.0 }
 0x1f3   : > { %v1060_v41 = vmax.f32 %v922_v38, 0.0 }
 0x1f4   : > { %v1061_v45 = vmax.f32 %v924_v42, 0.0 }
 0x1f5   : > { %v1116_v46 = vpack.c.bf16 %v1060_v41, %v1058_v43 }
 0x1f6   : > { %v1117_v47 = vpack.c.bf16 %v1061_v45, %v1059_v44  ;;  %v927_v48 = vpop.f32.mrb[16].mxu1 }
 0x1f7   : > { %v928_v49 = vadd.f32 %v927_v48, %v2843_v50  ;;  %v929_v52 = vpop.f32.mrb[17].mxu1 }
 0x1f8   : > { %v930_v53 = vadd.f32 %v929_v52, %v2845_v51  ;;  %v931_v54 = vpop.f32.mrb[18].mxu1  ;;  %1333 = vmatprep.mubr.bf16.mxu0 %v1117_v47 }
 0x1f9   : > { %v932_v55 = vadd.f32 %v931_v54, %v2843_v50  ;;  %v933_v40 = vpop.f32.mrb[19].mxu1  ;;  %1334 = vmatmul.mubr.bf16.gmra.mrb[44].mxu0 %v1116_v46  ;;  %v1062_v57 = vmax.f32 %v928_v49, 0.0 }
 0x1fa   : > { %v934_v56 = vadd.f32 %v933_v40, %v2845_v51  ;;  %v1063_v59 = vmax.f32 %v930_v53, 0.0 }
 0x1fb   : > { %v1064_v58 = vmax.f32 %v932_v55, 0.0 }
 0x1fc   : > { %v1065_v60 = vmax.f32 %v934_v56, 0.0 }
 0x1fd   : > { %v1118_v61 = vpack.c.bf16 %v1064_v58, %v1062_v57 }
 0x1fe   : > { %v1119_v62 = vpack.c.bf16 %v1065_v60, %v1063_v59  ;;  %v937_v63 = vpop.f32.mrb[20].mxu1 }
 0x1ff   : > { %v938_v0 = vadd.f32 %v937_v63, %v2843_v50  ;;  %v939_v1 = vpop.f32.mrb[21].mxu1 }
 0x200   : > { %v940_v2 = vadd.f32 %v939_v1, %v2845_v51  ;;  %v941_v3 = vpop.f32.mrb[22].mxu1  ;;  %1341 = vmatprep.mubr.bf16.mxu0 %v1119_v62 }
 0x201   : > { %v942_v4 = vadd.f32 %v941_v3, %v2843_v50  ;;  %v943_v5 = vpop.f32.mrb[23].mxu1  ;;  %1342 = vmatmul.mubr.bf16.gmra.mrb[48].mxu0 %v1118_v61  ;;  %v1066_v7 = vmax.f32 %v938_v0, 0.0 }
 0x202   : > { %v944_v6 = vadd.f32 %v943_v5, %v2845_v51  ;;  %v1067_v9 = vmax.f32 %v940_v2, 0.0 }
 0x203   : > { %v1068_v8 = vmax.f32 %v942_v4, 0.0 }
 0x204   : > { %v1069_v10 = vmax.f32 %v944_v6, 0.0 }
 0x205   : > { %v1120_v11 = vpack.c.bf16 %v1068_v8, %v1066_v7 }
 0x206   : > { %v1121_v12 = vpack.c.bf16 %v1069_v10, %v1067_v9  ;;  %v947_v13 = vpop.f32.mrb[24].mxu1 }
 0x207   : > { %v948_v14 = vadd.f32 %v947_v13, %v2843_v50  ;;  %v949_v15 = vpop.f32.mrb[25].mxu1 }
 0x208   : > { %v950_v16 = vadd.f32 %v949_v15, %v2845_v51  ;;  %v951_v17 = vpop.f32.mrb[26].mxu1  ;;  %1349 = vmatprep.mubr.bf16.mxu0 %v1121_v12 }
 0x209   : > { %v952_v18 = vadd.f32 %v951_v17, %v2843_v50  ;;  %v953_v19 = vpop.f32.mrb[27].mxu1  ;;  %1350 = vmatmul.mubr.bf16.gmra.mrb[52].mxu0 %v1120_v11  ;;  %v1070_v21 = vmax.f32 %v948_v14, 0.0 }
 0x20a   : > { %v954_v20 = vadd.f32 %v953_v19, %v2845_v51  ;;  %v1071_v23 = vmax.f32 %v950_v16, 0.0 }
 0x20b   : > { %v1072_v22 = vmax.f32 %v952_v18, 0.0 }
 0x20c   : > { %v1073_v24 = vmax.f32 %v954_v20, 0.0 }
 0x20d   : > { %v1122_v25 = vpack.c.bf16 %v1072_v22, %v1070_v21 }
 0x20e   : > { %v1123_v26 = vpack.c.bf16 %v1073_v24, %v1071_v23  ;;  %v957_v27 = vpop.f32.mrb[28].mxu1 }
 0x20f   : > { %v958_v28 = vadd.f32 %v957_v27, %v2843_v50  ;;  %v959_v29 = vpop.f32.mrb[29].mxu1 }
 0x210   : > { %v960_v30 = vadd.f32 %v959_v29, %v2845_v51  ;;  %v961_v31 = vpop.f32.mrb[30].mxu1  ;;  %1357 = vmatprep.mubr.bf16.mxu0 %v1123_v26 }
 0x211   : > { %v962_v32 = vadd.f32 %v961_v31, %v2843_v50  ;;  %v963_v33 = vpop.f32.mrb[31].mxu1  ;;  %1358 = vmatmul.mubr.bf16.gmra.mrb[56].mxu0 %v1122_v25  ;;  %v1074_v35 = vmax.f32 %v958_v28, 0.0 }
 0x212   : > { %v964_v34 = vadd.f32 %v963_v33, %v2845_v51  ;;  %v1075_v37 = vmax.f32 %v960_v30, 0.0 }
 0x213   : > { %v1076_v36 = vmax.f32 %v962_v32, 0.0 }
 0x214   : > { %v1077_v38 = vmax.f32 %v964_v34, 0.0 }
 0x215   : > { %v1124_v39 = vpack.c.bf16 %v1076_v36, %v1074_v35  ;;  %v2441_v36 = vld [vmem:[%s3057_s7 + $0x20] sm:$0xff]  }
 0x216   : > { %v1125_v42 = vpack.c.bf16 %v1077_v38, %v1075_v37  ;;  %v967_v43 = vpop.f32.mrb[32].mxu1  ;;  %2324 = vmatprep.subr.bf16.mxu1 %v2441_v36 }
 0x217   : > { %v968_v41 = vadd.f32 %v967_v43, %v2843_v50  ;;  %v969_v44 = vpop.f32.mrb[33].mxu1  ;;  %2325 = vmatpush3.bf16.msra.mxu1 %v2441_v36 }
 0x218   : > { %v970_v45 = vadd.f32 %v969_v44, %v2845_v51  ;;  %v971_v46 = vpop.f32.mrb[34].mxu1  ;;  %1365 = vmatprep.mubr.bf16.mxu0 %v1125_v42 }
 0x219   : > { %v972_v47 = vadd.f32 %v971_v46, %v2843_v50  ;;  %v973_v48 = vpop.f32.mrb[35].mxu1  ;;  %1366 = vmatmul.mubr.bf16.gmra.mrb[60].mxu0 %v1124_v39  ;;  %v1078_v52 = vmax.f32 %v968_v41, 0.0 }
 0x21a   : > { %v974_v49 = vadd.f32 %v973_v48, %v2845_v51  ;;  %v1079_v54 = vmax.f32 %v970_v45, 0.0  ;;  %v2442_v45 = vld [vmem:[%s3057_s7 + $0x28] sm:$0xff]  }
 0x21b   : > { %v1080_v53 = vmax.f32 %v972_v47, 0.0  ;;  %2326 = vmatprep.subr.bf16.mxu1 %v2442_v45 }
 0x21c   : > { %v1081_v55 = vmax.f32 %v974_v49, 0.0  ;;  %2327 = vmatpush3.bf16.msra.mxu1 %v2442_v45 }
 0x21d   : > { %v1126_v40 = vpack.c.bf16 %v1080_v53, %v1078_v52 }
 0x21e   : > { %v1127_v56 = vpack.c.bf16 %v1081_v55, %v1079_v54  ;;  %v977_v57 = vpop.f32.mrb[36].mxu1  ;;  %v2443_v55 = vld [vmem:[%s3057_s7 + $0x30] sm:$0xff]  }
 0x21f   : > { %v978_v58 = vadd.f32 %v977_v57, %v2843_v50  ;;  %v979_v59 = vpop.f32.mrb[37].mxu1  ;;  %2328 = vmatprep.subr.bf16.mxu1 %v2443_v55 }
 0x220   : > { %v980_v60 = vadd.f32 %v979_v59, %v2845_v51  ;;  %v981_v61 = vpop.f32.mrb[38].mxu1  ;;  %1373 = vmatprep.mubr.bf16.mxu0 %v1127_v56  ;;  %2329 = vmatpush3.bf16.msra.mxu1 %v2443_v55 }
 0x221   : > { %v982_v62 = vadd.f32 %v981_v61, %v2843_v50  ;;  %v983_v63 = vpop.f32.mrb[39].mxu1  ;;  %1374 = vmatmul.mubr.bf16.gmra.mrb[64].mxu0 %v1126_v40  ;;  %v1082_v1 = vmax.f32 %v978_v58, 0.0 }
 0x222   : > { %v984_v0 = vadd.f32 %v983_v63, %v2845_v51  ;;  %v1083_v3 = vmax.f32 %v980_v60, 0.0 }
 0x223   : > { %v1084_v2 = vmax.f32 %v982_v62, 0.0  ;;  %v2444_v62 = vld [vmem:[%s3057_s7 + $0x38] sm:$0xff]  }
 0x224   : > { %v1085_v4 = vmax.f32 %v984_v0, 0.0  ;;  %2330 = vmatprep.subr.bf16.mxu1 %v2444_v62 }
 0x225   : > { %v1128_v5 = vpack.c.bf16 %v1084_v2, %v1082_v1  ;;  %2331 = vmatpush3.bf16.msra.mxu1 %v2444_v62 }
 0x226   : > { %v1129_v6 = vpack.c.bf16 %v1085_v4, %v1083_v3  ;;  %v987_v7 = vpop.f32.mrb[40].mxu1 }
 0x227   : > { %v988_v8 = vadd.f32 %v987_v7, %v2843_v50  ;;  %v989_v9 = vpop.f32.mrb[41].mxu1 }
 0x228   : > { %v990_v10 = vadd.f32 %v989_v9, %v2845_v51  ;;  %v991_v11 = vpop.f32.mrb[42].mxu1  ;;  %1381 = vmatprep.mubr.bf16.mxu0 %v1129_v6 }
 0x229   : > { %v992_v12 = vadd.f32 %v991_v11, %v2843_v50  ;;  %v993_v13 = vpop.f32.mrb[43].mxu1  ;;  %1382 = vmatmul.mubr.bf16.gmra.mrb[68].mxu0 %v1128_v5  ;;  %v1086_v15 = vmax.f32 %v988_v8, 0.0 }
 0x22a   : > { %v994_v14 = vadd.f32 %v993_v13, %v2845_v51  ;;  %v1087_v17 = vmax.f32 %v990_v10, 0.0 }
 0x22b   : > { %v1088_v16 = vmax.f32 %v992_v12, 0.0 }
 0x22c   : > { %v1089_v18 = vmax.f32 %v994_v14, 0.0 }
 0x22d   : > { %v1130_v19 = vpack.c.bf16 %v1088_v16, %v1086_v15 }
 0x22e   : > { %v1131_v20 = vpack.c.bf16 %v1089_v18, %v1087_v17  ;;  %v997_v21 = vpop.f32.mrb[44].mxu1 }
 0x22f   : > { %v998_v22 = vadd.f32 %v997_v21, %v2843_v50  ;;  %v999_v23 = vpop.f32.mrb[45].mxu1 }
 0x230   : > { %v1000_v24 = vadd.f32 %v999_v23, %v2845_v51  ;;  %v1001_v25 = vpop.f32.mrb[46].mxu1  ;;  %1389 = vmatprep.mubr.bf16.mxu0 %v1131_v20 }
 0x231   : > { %v1002_v26 = vadd.f32 %v1001_v25, %v2843_v50  ;;  %v1003_v27 = vpop.f32.mrb[47].mxu1  ;;  %1390 = vmatmul.mubr.bf16.gmra.mrb[72].mxu0 %v1130_v19  ;;  %v1090_v29 = vmax.f32 %v998_v22, 0.0 }
 0x232   : > { %v1004_v28 = vadd.f32 %v1003_v27, %v2845_v51  ;;  %v1091_v31 = vmax.f32 %v1000_v24, 0.0 }
 0x233   : > { %v1092_v30 = vmax.f32 %v1002_v26, 0.0 }
 0x234   : > { %v1093_v32 = vmax.f32 %v1004_v28, 0.0 }
 0x235   : > { %v1132_v33 = vpack.c.bf16 %v1092_v30, %v1090_v29 }
 0x236   : > { %v1133_v34 = vpack.c.bf16 %v1093_v32, %v1091_v31  ;;  %v1007_v35 = vpop.f32.mrb[48].mxu1 }
 0x237   : > { %v1008_v37 = vadd.f32 %v1007_v35, %v2843_v50  ;;  %v1009_v38 = vpop.f32.mrb[49].mxu1 }
 0x238   : > { %v1010_v39 = vadd.f32 %v1009_v38, %v2845_v51  ;;  %v1011_v42 = vpop.f32.mrb[50].mxu1  ;;  %1397 = vmatprep.mubr.bf16.mxu0 %v1133_v34  ;;  %v2938_v34 = vld [vmem:[%s3056_s6] ss:$0 sm:$0xff] }
 0x239   : > { %v1012_v43 = vadd.f32 %v1011_v42, %v2843_v50  ;;  %v1013_v41 = vpop.f32.mrb[51].mxu1  ;;  %1398 = vmatmul.mubr.bf16.gmra.mrb[76].mxu0 %v1132_v33  ;;  %v1094_v46 = vmax.f32 %v1008_v37, 0.0 }
 0x23a   : > { %v1014_v44 = vadd.f32 %v1013_v41, %v2845_v51  ;;  %v1095_v48 = vmax.f32 %v1010_v39, 0.0 }
 0x23b   : > { %v1096_v47 = vmax.f32 %v1012_v43, 0.0 }
 0x23c   : > { %v1097_v49 = vmax.f32 %v1014_v44, 0.0 }
 0x23d   : > { %v1134_v52 = vpack.c.bf16 %v1096_v47, %v1094_v46 }
 0x23e   : > { %v1135_v53 = vpack.c.bf16 %v1097_v49, %v1095_v48  ;;  %v1017_v54 = vpop.f32.mrb[52].mxu1 }
 0x23f   : > { %v1018_v40 = vadd.f32 %v1017_v54, %v2843_v50  ;;  %v1019_v56 = vpop.f32.mrb[53].mxu1 }
 0x240   : > { %v1020_v57 = vadd.f32 %v1019_v56, %v2845_v51  ;;  %v1021_v58 = vpop.f32.mrb[54].mxu1  ;;  %1405 = vmatprep.mubr.bf16.mxu0 %v1135_v53 }
 0x241   : > { %v1022_v59 = vadd.f32 %v1021_v58, %v2843_v50  ;;  %v1023_v60 = vpop.f32.mrb[55].mxu1  ;;  %1406 = vmatmul.mubr.bf16.gmra.mrb[80].mxu0 %v1134_v52  ;;  %v1098_v63 = vmax.f32 %v1018_v40, 0.0 }
 0x242   : > { %v1024_v61 = vadd.f32 %v1023_v60, %v2845_v51  ;;  %v1099_v1 = vmax.f32 %v1020_v57, 0.0 }
 0x243   : > { %v1100_v0 = vmax.f32 %v1022_v59, 0.0 }
 0x244   : > { %v1101_v2 = vmax.f32 %v1024_v61, 0.0 }
 0x245   : > { %v1136_v3 = vpack.c.bf16 %v1100_v0, %v1098_v63 }
 0x246   : > { %v1137_v4 = vpack.c.bf16 %v1101_v2, %v1099_v1  ;;  %v1027_v5 = vpop.f32.mrb[56].mxu1 }
 0x247   : > { %v1028_v6 = vadd.f32 %v1027_v5, %v2843_v50  ;;  %v1029_v7 = vpop.f32.mrb[57].mxu1 }
 0x248   : > { %v1030_v8 = vadd.f32 %v1029_v7, %v2845_v51  ;;  %v1031_v9 = vpop.f32.mrb[58].mxu1  ;;  %1413 = vmatprep.mubr.bf16.mxu0 %v1137_v4 }
 0x249   : > { %v1032_v10 = vadd.f32 %v1031_v9, %v2843_v50  ;;  %v1033_v11 = vpop.f32.mrb[59].mxu1  ;;  %1414 = vmatmul.mubr.bf16.gmra.mrb[84].mxu0 %v1136_v3  ;;  %v1102_v13 = vmax.f32 %v1028_v6, 0.0 }
 0x24a   : > { %v1034_v12 = vadd.f32 %v1033_v11, %v2845_v51  ;;  %v1103_v15 = vmax.f32 %v1030_v8, 0.0 }
 0x24b   : > { %v1104_v14 = vmax.f32 %v1032_v10, 0.0 }
 0x24c   : > { %v1105_v16 = vmax.f32 %v1034_v12, 0.0 }
 0x24d   : > { %v1138_v17 = vpack.c.bf16 %v1104_v14, %v1102_v13 }
 0x24e   : > { %v1139_v18 = vpack.c.bf16 %v1105_v16, %v1103_v15  ;;  %v1037_v19 = vpop.f32.mrb[60].mxu1 }
 0x24f   : > { %v1038_v20 = vadd.f32 %v1037_v19, %v2843_v50  ;;  %v1039_v21 = vpop.f32.mrb[61].mxu1 }
 0x250   : > { %v1040_v22 = vadd.f32 %v1039_v21, %v2845_v51  ;;  %v1041_v23 = vpop.f32.mrb[62].mxu1  ;;  %1421 = vmatprep.mubr.bf16.mxu0 %v1139_v18 }
 0x251   : > { %v1042_v24 = vadd.f32 %v1041_v23, %v2843_v50  ;;  %v1043_v25 = vpop.f32.mrb[63].mxu1  ;;  %1422 = vmatmul.mubr.bf16.gmra.mrb[88].mxu0 %v1138_v17  ;;  %v1106_v27 = vmax.f32 %v1038_v20, 0.0 }
 0x252   : > { %v1044_v26 = vadd.f32 %v1043_v25, %v2845_v51  ;;  %v1107_v29 = vmax.f32 %v1040_v22, 0.0 }
 0x253   : > { %v1108_v28 = vmax.f32 %v1042_v24, 0.0 }
 0x254   : > { %v1109_v30 = vmax.f32 %v1044_v26, 0.0 }
 0x255   : > { %v1140_v31 = vpack.c.bf16 %v1108_v28, %v1106_v27 }
 0x256   : > { %v1141_v32 = vpack.c.bf16 %v1109_v30, %v1107_v29 }
 0x258   : > { %1429 = vmatprep.mubr.bf16.mxu0 %v1141_v32 }
 0x259   : > { %1430 = vmatmul.mubr.bf16.gmra.mrb[92].mxu0 %v1140_v31 }
 0x2b4   : > { %v2148_v33 = vpop.f32.mrb[32].mxu0 }
 0x2b5   : > { %v2149_v35 = vpop.f32.mrb[33].mxu0 }
 0x2b6   : > { %v2150_v50 = vadd.f32 %v2149_v35, %v2148_v33  ;;  %v2151_v36 = vpop.f32.mrb[34].mxu0 }
 0x2b7   : > { %v2152_v37 = vpop.f32.mrb[35].mxu0 }
 0x2b8   : > { %v1312_v51 = vadd.f32 %v2150_v50, %v2938_v34  ;;  %v2153_v38 = vadd.f32 %v2152_v37, %v2151_v36 }
 0x2ba   : > { %v1315_v39 = vadd.f32 %v2153_v38, %v2938_v34  ;;  %v1438_v42 = vmax.f32 %v1312_v51, 0.0 }
 0x2bc   : > { %v1439_v43 = vmax.f32 %v1315_v39, 0.0  ;;  %v2154_v41 = vpop.f32.mrb[36].mxu0 }
 0x2bd   : > { %v2155_v44 = vpop.f32.mrb[37].mxu0 }
 0x2be   : > { %v2156_v45 = vadd.f32 %v2155_v44, %v2154_v41  ;;  %v2157_v46 = vpop.f32.mrb[38].mxu0  ;;  %v1470_v47 = vpack.c.bf16 %v1439_v43, %v1438_v42 }
 0x2bf   : > { %v2158_v48 = vpop.f32.mrb[39].mxu0 }
 0x2c0   : > { %v1320_v49 = vadd.f32 %v2156_v45, %v2938_v34  ;;  %v2159_v52 = vadd.f32 %v2158_v48, %v2157_v46  ;;  %2332 = vmatprep.mubr.bf16.mxu1 %v1470_v47 }
 0x2c2   : > { %v1323_v53 = vadd.f32 %v2159_v52, %v2938_v34  ;;  %v1440_v54 = vmax.f32 %v1320_v49, 0.0 }
 0x2c4   : > { %v1441_v55 = vmax.f32 %v1323_v53, 0.0  ;;  %v2160_v40 = vpop.f32.mrb[40].mxu0 }
 0x2c5   : > { %v2161_v56 = vpop.f32.mrb[41].mxu0 }
 0x2c6   : > { %v1471_v57 = vpack.c.bf16 %v1441_v55, %v1440_v54  ;;  %v2162_v58 = vadd.f32 %v2161_v56, %v2160_v40  ;;  %v2163_v59 = vpop.f32.mrb[42].mxu0 }
 0x2c7   : > { %v2164_v60 = vpop.f32.mrb[43].mxu0 }
 0x2c8   : > { %v1328_v61 = vadd.f32 %v2162_v58, %v2938_v34  ;;  %v2165_v62 = vadd.f32 %v2164_v60, %v2163_v59  ;;  %2333 = vmatmul.mubr.bf16.vlgmr.msra.gmra.mrb[64].mxu1 %v1471_v57 }
 0x2ca   : > { %v1331_v63 = vadd.f32 %v2165_v62, %v2938_v34  ;;  %v1442_v0 = vmax.f32 %v1328_v61, 0.0 }
 0x2cc   : > { %v1443_v1 = vmax.f32 %v1331_v63, 0.0  ;;  %v2166_v2 = vpop.f32.mrb[44].mxu0 }
 0x2cd   : > { %v2167_v3 = vpop.f32.mrb[45].mxu0 }
 0x2ce   : > { %v2168_v4 = vadd.f32 %v2167_v3, %v2166_v2  ;;  %v2169_v5 = vpop.f32.mrb[46].mxu0  ;;  %v1472_v6 = vpack.c.bf16 %v1443_v1, %v1442_v0 }
 0x2cf   : > { %v2170_v7 = vpop.f32.mrb[47].mxu0 }
 0x2d0   : > { %v1336_v8 = vadd.f32 %v2168_v4, %v2938_v34  ;;  %v2171_v9 = vadd.f32 %v2170_v7, %v2169_v5  ;;  %2336 = vmatprep.mubr.bf16.mxu1 %v1472_v6 }
 0x2d2   : > { %v1339_v10 = vadd.f32 %v2171_v9, %v2938_v34  ;;  %v1444_v11 = vmax.f32 %v1336_v8, 0.0 }
 0x2d4   : > { %v1445_v12 = vmax.f32 %v1339_v10, 0.0  ;;  %v2172_v13 = vpop.f32.mrb[48].mxu0 }
 0x2d5   : > { %v2173_v14 = vpop.f32.mrb[49].mxu0 }
 0x2d6   : > { %v2174_v15 = vadd.f32 %v2173_v14, %v2172_v13  ;;  %v2175_v16 = vpop.f32.mrb[50].mxu0  ;;  %v1473_v17 = vpack.c.bf16 %v1445_v12, %v1444_v11 }
 0x2d7   : > { %v2176_v18 = vpop.f32.mrb[51].mxu0 }
 0x2d8   : > { %v1344_v19 = vadd.f32 %v2174_v15, %v2938_v34  ;;  %v2177_v20 = vadd.f32 %v2176_v18, %v2175_v16  ;;  %2337 = vmatmul.mubr.bf16.gmra.mrb[68].mxu1 %v1473_v17 }
 0x2da   : > { %v1347_v21 = vadd.f32 %v2177_v20, %v2938_v34  ;;  %v1446_v22 = vmax.f32 %v1344_v19, 0.0 }
 0x2dc   : > { %v1447_v23 = vmax.f32 %v1347_v21, 0.0  ;;  %v2178_v24 = vpop.f32.mrb[52].mxu0 }
 0x2dd   : > { %v2179_v25 = vpop.f32.mrb[53].mxu0 }
 0x2de   : > { %v2180_v26 = vadd.f32 %v2179_v25, %v2178_v24  ;;  %v2181_v27 = vpop.f32.mrb[54].mxu0  ;;  %v1474_v28 = vpack.c.bf16 %v1447_v23, %v1446_v22 }
 0x2df   : > { %v2182_v29 = vpop.f32.mrb[55].mxu0 }
 0x2e0   : > { %v1352_v30 = vadd.f32 %v2180_v26, %v2938_v34  ;;  %v2183_v31 = vadd.f32 %v2182_v29, %v2181_v27  ;;  %2340 = vmatprep.mubr.bf16.mxu1 %v1474_v28 }
 0x2e2   : > { %v1355_v32 = vadd.f32 %v2183_v31, %v2938_v34  ;;  %v1448_v33 = vmax.f32 %v1352_v30, 0.0 }
 0x2e4   : > { %v1449_v35 = vmax.f32 %v1355_v32, 0.0  ;;  %v2184_v50 = vpop.f32.mrb[56].mxu0 }
 0x2e5   : > { %v2185_v36 = vpop.f32.mrb[57].mxu0 }
 0x2e6   : > { %v2186_v37 = vadd.f32 %v2185_v36, %v2184_v50  ;;  %v2187_v51 = vpop.f32.mrb[58].mxu0  ;;  %v1475_v38 = vpack.c.bf16 %v1449_v35, %v1448_v33 }
 0x2e7   : > { %v2188_v39 = vpop.f32.mrb[59].mxu0 }
 0x2e8   : > { %v1360_v42 = vadd.f32 %v2186_v37, %v2938_v34  ;;  %v2189_v43 = vadd.f32 %v2188_v39, %v2187_v51  ;;  %2341 = vmatmul.mubr.bf16.gmra.mrb[72].mxu1 %v1475_v38 }
 0x2ea   : > { %v1363_v41 = vadd.f32 %v2189_v43, %v2938_v34  ;;  %v1450_v44 = vmax.f32 %v1360_v42, 0.0 }
 0x2ec   : > { %v1451_v45 = vmax.f32 %v1363_v41, 0.0  ;;  %v2190_v46 = vpop.f32.mrb[60].mxu0 }
 0x2ed   : > { %v2191_v47 = vpop.f32.mrb[61].mxu0 }
 0x2ee   : > { %v2192_v48 = vadd.f32 %v2191_v47, %v2190_v46  ;;  %v2193_v49 = vpop.f32.mrb[62].mxu0  ;;  %v1476_v52 = vpack.c.bf16 %v1451_v45, %v1450_v44 }
 0x2ef   : > { %v2194_v53 = vpop.f32.mrb[63].mxu0 }
 0x2f0   : > { %v1368_v54 = vadd.f32 %v2192_v48, %v2938_v34  ;;  %v2195_v55 = vadd.f32 %v2194_v53, %v2193_v49  ;;  %2344 = vmatprep.mubr.bf16.mxu1 %v1476_v52 }
 0x2f2   : > { %v1371_v40 = vadd.f32 %v2195_v55, %v2938_v34  ;;  %v1452_v56 = vmax.f32 %v1368_v54, 0.0 }
 0x2f4   : > { %v1453_v57 = vmax.f32 %v1371_v40, 0.0  ;;  %v2196_v58 = vpop.f32.mrb[64].mxu0 }
 0x2f5   : > { %v2197_v59 = vpop.f32.mrb[65].mxu0 }
 0x2f6   : > { %v2198_v60 = vadd.f32 %v2197_v59, %v2196_v58  ;;  %v2199_v61 = vpop.f32.mrb[66].mxu0  ;;  %v1477_v62 = vpack.c.bf16 %v1453_v57, %v1452_v56 }
 0x2f7   : > { %v2200_v63 = vpop.f32.mrb[67].mxu0 }
 0x2f8   : > { %v1376_v0 = vadd.f32 %v2198_v60, %v2938_v34  ;;  %v2201_v1 = vadd.f32 %v2200_v63, %v2199_v61  ;;  %2345 = vmatmul.mubr.bf16.gmra.mrb[76].mxu1 %v1477_v62 }
 0x2fa   : > { %v1379_v2 = vadd.f32 %v2201_v1, %v2938_v34  ;;  %v1454_v3 = vmax.f32 %v1376_v0, 0.0 }
 0x2fc   : > { %v1455_v4 = vmax.f32 %v1379_v2, 0.0  ;;  %v2202_v5 = vpop.f32.mrb[68].mxu0 }
 0x2fd   : > { %v2203_v6 = vpop.f32.mrb[69].mxu0 }
 0x2fe   : > { %v2204_v7 = vadd.f32 %v2203_v6, %v2202_v5  ;;  %v2205_v8 = vpop.f32.mrb[70].mxu0  ;;  %v1478_v9 = vpack.c.bf16 %v1455_v4, %v1454_v3 }
 0x2ff   : > { %v2206_v10 = vpop.f32.mrb[71].mxu0 }
 0x300   : > { %v1384_v11 = vadd.f32 %v2204_v7, %v2938_v34  ;;  %v2207_v12 = vadd.f32 %v2206_v10, %v2205_v8  ;;  %2348 = vmatprep.mubr.bf16.mxu1 %v1478_v9 }
 0x302   : > { %v1387_v13 = vadd.f32 %v2207_v12, %v2938_v34  ;;  %v1456_v14 = vmax.f32 %v1384_v11, 0.0 }
 0x304   : > { %v1457_v15 = vmax.f32 %v1387_v13, 0.0  ;;  %v2208_v16 = vpop.f32.mrb[72].mxu0 }
 0x305   : > { %v2209_v17 = vpop.f32.mrb[73].mxu0 }
 0x306   : > { %v2210_v18 = vadd.f32 %v2209_v17, %v2208_v16  ;;  %v2211_v19 = vpop.f32.mrb[74].mxu0  ;;  %v1479_v20 = vpack.c.bf16 %v1457_v15, %v1456_v14 }
 0x307   : > { %v2212_v21 = vpop.f32.mrb[75].mxu0 }
 0x308   : > { %v1392_v22 = vadd.f32 %v2210_v18, %v2938_v34  ;;  %v2213_v23 = vadd.f32 %v2212_v21, %v2211_v19  ;;  %2349 = vmatmul.mubr.bf16.gmra.mrb[80].mxu1 %v1479_v20  ;;  %v2975_v20 = vld [vmem:[%s3058_s8] ss:$0 sm:$0xff] }
 0x30a   : > { %v1395_v24 = vadd.f32 %v2213_v23, %v2938_v34  ;;  %v1458_v25 = vmax.f32 %v1392_v22, 0.0 }
 0x30c   : > { %v1459_v26 = vmax.f32 %v1395_v24, 0.0  ;;  %v2214_v27 = vpop.f32.mrb[76].mxu0 }
 0x30d   : > { %v2215_v28 = vpop.f32.mrb[77].mxu0 }
 0x30e   : > { %v2216_v29 = vadd.f32 %v2215_v28, %v2214_v27  ;;  %v2217_v30 = vpop.f32.mrb[78].mxu0  ;;  %v1480_v31 = vpack.c.bf16 %v1459_v26, %v1458_v25 }
 0x30f   : > { %v2218_v32 = vpop.f32.mrb[79].mxu0 }
 0x310   : > { %v1400_v33 = vadd.f32 %v2216_v29, %v2938_v34  ;;  %v2219_v35 = vadd.f32 %v2218_v32, %v2217_v30  ;;  %2352 = vmatprep.mubr.bf16.mxu1 %v1480_v31 }
 0x312   : > { %v1403_v50 = vadd.f32 %v2219_v35, %v2938_v34  ;;  %v1460_v36 = vmax.f32 %v1400_v33, 0.0 }
 0x314   : > { %v1461_v37 = vmax.f32 %v1403_v50, 0.0  ;;  %v2220_v51 = vpop.f32.mrb[80].mxu0 }
 0x315   : > { %v2221_v38 = vpop.f32.mrb[81].mxu0 }
 0x316   : > { %v2222_v39 = vadd.f32 %v2221_v38, %v2220_v51  ;;  %v2223_v42 = vpop.f32.mrb[82].mxu0  ;;  %v1481_v43 = vpack.c.bf16 %v1461_v37, %v1460_v36 }
 0x317   : > { %v2224_v41 = vpop.f32.mrb[83].mxu0 }
 0x318   : > { %v1408_v44 = vadd.f32 %v2222_v39, %v2938_v34  ;;  %v2225_v45 = vadd.f32 %v2224_v41, %v2223_v42  ;;  %2353 = vmatmul.mubr.bf16.gmra.mrb[84].mxu1 %v1481_v43 }
 0x31a   : > { %v1411_v46 = vadd.f32 %v2225_v45, %v2938_v34  ;;  %v1462_v47 = vmax.f32 %v1408_v44, 0.0 }
 0x31c   : > { %v1463_v48 = vmax.f32 %v1411_v46, 0.0  ;;  %v2226_v49 = vpop.f32.mrb[84].mxu0 }
 0x31d   : > { %v2227_v52 = vpop.f32.mrb[85].mxu0 }
 0x31e   : > { %v2228_v53 = vadd.f32 %v2227_v52, %v2226_v49  ;;  %v2229_v54 = vpop.f32.mrb[86].mxu0  ;;  %v1482_v55 = vpack.c.bf16 %v1463_v48, %v1462_v47 }
 0x31f   : > { %v2230_v40 = vpop.f32.mrb[87].mxu0 }
 0x320   : > { %v1416_v56 = vadd.f32 %v2228_v53, %v2938_v34  ;;  %v2231_v57 = vadd.f32 %v2230_v40, %v2229_v54  ;;  %2356 = vmatprep.mubr.bf16.mxu1 %v1482_v55 }
 0x322   : > { %v1419_v58 = vadd.f32 %v2231_v57, %v2938_v34  ;;  %v1464_v59 = vmax.f32 %v1416_v56, 0.0 }
 0x324   : > { %v1465_v60 = vmax.f32 %v1419_v58, 0.0  ;;  %v2232_v61 = vpop.f32.mrb[88].mxu0 }
 0x325   : > { %v2233_v62 = vpop.f32.mrb[89].mxu0 }
 0x326   : > { %v2234_v63 = vadd.f32 %v2233_v62, %v2232_v61  ;;  %v2235_v0 = vpop.f32.mrb[90].mxu0  ;;  %v1483_v1 = vpack.c.bf16 %v1465_v60, %v1464_v59 }
 0x327   : > { %v2236_v2 = vpop.f32.mrb[91].mxu0 }
 0x328   : > { %v1424_v3 = vadd.f32 %v2234_v63, %v2938_v34  ;;  %v2237_v4 = vadd.f32 %v2236_v2, %v2235_v0  ;;  %2357 = vmatmul.mubr.bf16.gmra.mrb[88].mxu1 %v1483_v1 }
 0x32a   : > { %v1427_v5 = vadd.f32 %v2237_v4, %v2938_v34  ;;  %v1466_v6 = vmax.f32 %v1424_v3, 0.0 }
 0x32c   : > { %v1467_v7 = vmax.f32 %v1427_v5, 0.0  ;;  %v2238_v8 = vpop.f32.mrb[92].mxu0 }
 0x32d   : > { %v2239_v9 = vpop.f32.mrb[93].mxu0 }
 0x32e   : > { %v2240_v10 = vadd.f32 %v2239_v9, %v2238_v8  ;;  %v2241_v11 = vpop.f32.mrb[94].mxu0  ;;  %v1484_v12 = vpack.c.bf16 %v1467_v7, %v1466_v6 }
 0x32f   : > { %v2242_v13 = vpop.f32.mrb[95].mxu0 }
 0x330   : > { %v1432_v14 = vadd.f32 %v2240_v10, %v2938_v34  ;;  %v2243_v15 = vadd.f32 %v2242_v13, %v2241_v11  ;;  %2360 = vmatprep.mubr.bf16.mxu1 %v1484_v12 }
 0x332   : > { %v1435_v16 = vadd.f32 %v2243_v15, %v2938_v34  ;;  %v1468_v17 = vmax.f32 %v1432_v14, 0.0 }
 0x334   : > { %v1469_v18 = vmax.f32 %v1435_v16, 0.0 }
 0x336   : > { %v1485_v19 = vpack.c.bf16 %v1469_v18, %v1468_v17 }
 0x338   : > { %2361 = vmatmul.mubr.bf16.gmra.mrb[92].mxu1 %v1485_v19 }
 0x39b   : > { %v2334_v21 = vpop.f32.mrb[64].mxu1 }
 0x39c   : > { %v1600_v22 = vadd.f32 %v2334_v21, %v2975_v20  ;;  %v1591_v23 = vpop.f32.mrb[65].mxu1 }
 0x39d   : > { %v1592_v24 = vadd.f32 %v2975_v20, %v1591_v23  ;;  %v2335_v25 = vpop.f32.mrb[66].mxu1 }
 0x39e   : > { %v2076_v26 = vmul.f32 -1.442695, %v1600_v22  ;;  %v1603_v27 = vadd.f32 %v2335_v25, %v2975_v20  ;;  %v1594_v34 = vpop.f32.mrb[67].mxu1 }
 0x39f   : > { %v2074_v28 = vmul.f32 -1.442695, %v1592_v24  ;;  %v1595_v29 = vadd.f32 %v2975_v20, %v1594_v34 }
 0x3a0   : > { %2445 = vpow2.f32 %v2076_v26  ;;  %v2077_v30 = vmul.f32 -1.442695, %v1603_v27 }
 0x3a1   : > { %2447 = vpow2.f32 %v2074_v28  ;;  %v2075_v31 = vmul.f32 -1.442695, %v1595_v29 }
 0x3a2   : > { %2449 = vpow2.f32 %v2077_v30 }
 0x3a3   : > { %2451 = vpow2.f32 %v2075_v31 }
 0x3aa   : > { %v2446_v32 = vpop.eup %2445 }
 0x3ab   : > { %v2448_v33 = vpop.eup %2447  ;;  %v1816_v35 = vadd.f32 1.0, %v2446_v32  ;;  %v2338_v50 = vpop.f32.mrb[68].mxu1 }
 0x3ac   : > { %v2450_v36 = vpop.eup %2449  ;;  %v1814_v37 = vadd.f32 1.0, %v2448_v33  ;;  %v1616_v51 = vadd.f32 %v2338_v50, %v2975_v20  ;;  %v1607_v38 = vpop.f32.mrb[69].mxu1 }
 0x3ad   : > { %v2452_v39 = vpop.eup %2451  ;;  %2453 = vrcp.f32 %v1816_v35  ;;  %v1817_v42 = vadd.f32 1.0, %v2450_v36  ;;  %v1608_v43 = vadd.f32 %v2975_v20, %v1607_v38  ;;  %v2339_v41 = vpop.f32.mrb[70].mxu1 }
 0x3ae   : > { %2455 = vrcp.f32 %v1814_v37  ;;  %v1815_v44 = vadd.f32 1.0, %v2452_v39  ;;  %v2080_v45 = vmul.f32 -1.442695, %v1616_v51  ;;  %v1619_v46 = vadd.f32 %v2339_v41, %v2975_v20  ;;  %v1610_v47 = vpop.f32.mrb[71].mxu1 }
 0x3af   : > { %2457 = vrcp.f32 %v1817_v42  ;;  %v2078_v48 = vmul.f32 -1.442695, %v1608_v43  ;;  %v1611_v49 = vadd.f32 %v2975_v20, %v1610_v47 }
 0x3b0   : > { %2459 = vrcp.f32 %v1815_v44  ;;  %v2081_v52 = vmul.f32 -1.442695, %v1619_v46 }
 0x3b1   : > { %2461 = vpow2.f32 %v2080_v45  ;;  %v2079_v53 = vmul.f32 -1.442695, %v1611_v49 }
 0x3b2   : > { %2463 = vpow2.f32 %v2078_v48 }
 0x3b3   : > { %2465 = vpow2.f32 %v2081_v52 }
 0x3b4   : > { %2467 = vpow2.f32 %v2079_v53 }
 0x3b7   : > { %v2454_v54 = vpop.eup %2453 }
 0x3b8   : > { %v2456_v55 = vpop.eup %2455  ;;  %1912 = vst [vmem:[%s2989_s29 + $0x10] sm:$0xff] %v2454_v54 }
 0x3b9   : > { %v2458_v40 = vpop.eup %2457  ;;  %1910 = vst [vmem:[%s2989_s29] sm:$0xff] %v2456_v55 }
 0x3ba   : > { %v2460_v56 = vpop.eup %2459  ;;  %1913 = vst [vmem:[%s2989_s29 + $0x18] sm:$0xff] %v2458_v40 }
 0x3bb   : > { %v2462_v57 = vpop.eup %2461  ;;  %1911 = vst [vmem:[%s2989_s29 + $0x8] sm:$0xff] %v2460_v56  ;;  %v2342_v58 = vpop.f32.mrb[72].mxu1 }
 0x3bc   : > { %v2464_v59 = vpop.eup %2463  ;;  %v1820_v60 = vadd.f32 1.0, %v2462_v57  ;;  %v1632_v61 = vadd.f32 %v2342_v58, %v2975_v20  ;;  %v1623_v62 = vpop.f32.mrb[73].mxu1 }
 0x3bd   : > { %v2466_v63 = vpop.eup %2465  ;;  %v1818_v0 = vadd.f32 1.0, %v2464_v59  ;;  %v1624_v1 = vadd.f32 %v2975_v20, %v1623_v62  ;;  %v2343_v2 = vpop.f32.mrb[74].mxu1 }
 0x3be   : > { %v2468_v3 = vpop.eup %2467  ;;  %2469 = vrcp.f32 %v1820_v60  ;;  %v1821_v4 = vadd.f32 1.0, %v2466_v63  ;;  %v2084_v5 = vmul.f32 -1.442695, %v1632_v61  ;;  %v1635_v6 = vadd.f32 %v2343_v2, %v2975_v20  ;;  %v1626_v7 = vpop.f32.mrb[75].mxu1 }
 0x3bf   : > { %2471 = vrcp.f32 %v1818_v0  ;;  %v1819_v8 = vadd.f32 1.0, %v2468_v3  ;;  %v2082_v9 = vmul.f32 -1.442695, %v1624_v1  ;;  %v1627_v10 = vadd.f32 %v2975_v20, %v1626_v7 }
 0x3c0   : > { %2473 = vrcp.f32 %v1821_v4  ;;  %v2085_v11 = vmul.f32 -1.442695, %v1635_v6 }
 0x3c1   : > { %2475 = vrcp.f32 %v1819_v8  ;;  %v2083_v12 = vmul.f32 -1.442695, %v1627_v10 }
 0x3c2   : > { %2477 = vpow2.f32 %v2084_v5 }
 0x3c3   : > { %2479 = vpow2.f32 %v2082_v9 }
 0x3c4   : > { %2481 = vpow2.f32 %v2085_v11 }
 0x3c5   : > { %2483 = vpow2.f32 %v2083_v12 }
 0x3c8   : > { %v2470_v13 = vpop.eup %2469 }
 0x3c9   : > { %v2472_v14 = vpop.eup %2471  ;;  %1916 = vst [vmem:[%s2989_s29 + $0x30] sm:$0xff] %v2470_v13 }
 0x3ca   : > { %v2474_v15 = vpop.eup %2473  ;;  %1914 = vst [vmem:[%s2989_s29 + $0x20] sm:$0xff] %v2472_v14 }
 0x3cb   : > { %v2476_v16 = vpop.eup %2475  ;;  %1917 = vst [vmem:[%s2989_s29 + $0x38] sm:$0xff] %v2474_v15  ;;  %v2346_v17 = vpop.f32.mrb[76].mxu1 }
 0x3cc   : > { %v2478_v18 = vpop.eup %2477  ;;  %1915 = vst [vmem:[%s2989_s29 + $0x28] sm:$0xff] %v2476_v16  ;;  %v1648_v19 = vadd.f32 %v2346_v17, %v2975_v20  ;;  %v1639_v21 = vpop.f32.mrb[77].mxu1 }
 0x3cd   : > { %v2480_v22 = vpop.eup %2479  ;;  %v1824_v23 = vadd.f32 1.0, %v2478_v18  ;;  %v1640_v24 = vadd.f32 %v2975_v20, %v1639_v21  ;;  %v2347_v25 = vpop.f32.mrb[78].mxu1 }
 0x3ce   : > { %v2482_v26 = vpop.eup %2481  ;;  %v1822_v27 = vadd.f32 1.0, %v2480_v22  ;;  %v1651_v34 = vadd.f32 %v2347_v25, %v2975_v20  ;;  %v1642_v28 = vpop.f32.mrb[79].mxu1  ;;  %v2088_v31 = vmul.f32 -1.442695, %v1648_v19 }
 0x3cf   : > { %v2484_v29 = vpop.eup %2483  ;;  %2485 = vrcp.f32 %v1824_v23  ;;  %v1825_v30 = vadd.f32 1.0, %v2482_v26  ;;  %v1643_v32 = vadd.f32 %v2975_v20, %v1642_v28  ;;  %v2086_v35 = vmul.f32 -1.442695, %v1640_v24 }
 0x3d0   : > { %2487 = vrcp.f32 %v1822_v27  ;;  %v1823_v33 = vadd.f32 1.0, %v2484_v29  ;;  %v2089_v50 = vmul.f32 -1.442695, %v1651_v34 }
 0x3d1   : > { %2489 = vrcp.f32 %v1825_v30  ;;  %v2087_v36 = vmul.f32 -1.442695, %v1643_v32 }
 0x3d2   : > { %2491 = vrcp.f32 %v1823_v33 }
 0x3d3   : > { %2493 = vpow2.f32 %v2088_v31 }
 0x3d4   : > { %2495 = vpow2.f32 %v2086_v35 }
 0x3d5   : > { %2497 = vpow2.f32 %v2089_v50 }
 0x3d6   : > { %2499 = vpow2.f32 %v2087_v36 }
 0x3d9   : > { %v2486_v37 = vpop.eup %2485 }
 0x3da   : > { %v2488_v51 = vpop.eup %2487  ;;  %1920 = vst [vmem:[%s2989_s29 + $0x50] sm:$0xff] %v2486_v37 }
 0x3db   : > { %v2490_v38 = vpop.eup %2489  ;;  %1918 = vst [vmem:[%s2989_s29 + $0x40] sm:$0xff] %v2488_v51  ;;  %v2350_v39 = vpop.f32.mrb[80].mxu1 }
 0x3dc   : > { %v2492_v42 = vpop.eup %2491  ;;  %1921 = vst [vmem:[%s2989_s29 + $0x58] sm:$0xff] %v2490_v38  ;;  %v1664_v43 = vadd.f32 %v2350_v39, %v2975_v20  ;;  %v1655_v41 = vpop.f32.mrb[81].mxu1 }
 0x3dd   : > { %v2494_v44 = vpop.eup %2493  ;;  %1919 = vst [vmem:[%s2989_s29 + $0x48] sm:$0xff] %v2492_v42  ;;  %v1656_v45 = vadd.f32 %v2975_v20, %v1655_v41  ;;  %v2351_v46 = vpop.f32.mrb[82].mxu1 }
 0x3de   : > { %v2496_v47 = vpop.eup %2495  ;;  %v1828_v48 = vadd.f32 1.0, %v2494_v44  ;;  %v1667_v49 = vadd.f32 %v2351_v46, %v2975_v20  ;;  %v1658_v52 = vpop.f32.mrb[83].mxu1  ;;  %v2092_v57 = vmul.f32 -1.442695, %v1664_v43 }
 0x3df   : > { %v2498_v53 = vpop.eup %2497  ;;  %v1826_v54 = vadd.f32 1.0, %v2496_v47  ;;  %v1659_v55 = vadd.f32 %v2975_v20, %v1658_v52  ;;  %v2090_v59 = vmul.f32 -1.442695, %v1656_v45 }
 0x3e0   : > { %v2500_v40 = vpop.eup %2499  ;;  %2501 = vrcp.f32 %v1828_v48  ;;  %v1829_v56 = vadd.f32 1.0, %v2498_v53  ;;  %v2093_v60 = vmul.f32 -1.442695, %v1667_v49 }
 0x3e1   : > { %2503 = vrcp.f32 %v1826_v54  ;;  %v1827_v58 = vadd.f32 1.0, %v2500_v40  ;;  %v2091_v61 = vmul.f32 -1.442695, %v1659_v55 }
 0x3e2   : > { %2505 = vrcp.f32 %v1829_v56 }
 0x3e3   : > { %2507 = vrcp.f32 %v1827_v58 }
 0x3e4   : > { %2509 = vpow2.f32 %v2092_v57 }
 0x3e5   : > { %2511 = vpow2.f32 %v2090_v59 }
 0x3e6   : > { %2513 = vpow2.f32 %v2093_v60 }
 0x3e7   : > { %2515 = vpow2.f32 %v2091_v61 }
 0x3ea   : > { %v2502_v62 = vpop.eup %2501 }
 0x3eb   : > { %v2504_v63 = vpop.eup %2503  ;;  %1924 = vst [vmem:[%s2989_s29 + $0x70] sm:$0xff] %v2502_v62  ;;  %v2354_v0 = vpop.f32.mrb[84].mxu1 }
 0x3ec   : > { %v2506_v1 = vpop.eup %2505  ;;  %1922 = vst [vmem:[%s2989_s29 + $0x60] sm:$0xff] %v2504_v63  ;;  %v1680_v2 = vadd.f32 %v2354_v0, %v2975_v20  ;;  %v1671_v3 = vpop.f32.mrb[85].mxu1 }
 0x3ed   : > { %v2508_v4 = vpop.eup %2507  ;;  %1925 = vst [vmem:[%s2989_s29 + $0x78] sm:$0xff] %v2506_v1  ;;  %v1672_v5 = vadd.f32 %v2975_v20, %v1671_v3  ;;  %v2355_v6 = vpop.f32.mrb[86].mxu1 }
 0x3ee   : > { %v2510_v7 = vpop.eup %2509  ;;  %1923 = vst [vmem:[%s2989_s29 + $0x68] sm:$0xff] %v2508_v4  ;;  %v2096_v8 = vmul.f32 -1.442695, %v1680_v2  ;;  %v1683_v9 = vadd.f32 %v2355_v6, %v2975_v20  ;;  %v1674_v10 = vpop.f32.mrb[87].mxu1 }
 0x3ef   : > { %v2512_v11 = vpop.eup %2511  ;;  %v1832_v12 = vadd.f32 1.0, %v2510_v7  ;;  %v1675_v13 = vadd.f32 %v2975_v20, %v1674_v10  ;;  %v2094_v18 = vmul.f32 -1.442695, %v1672_v5 }
 0x3f0   : > { %v2514_v14 = vpop.eup %2513  ;;  %v1830_v15 = vadd.f32 1.0, %v2512_v11  ;;  %2517 = vpow2.f32 %v2096_v8  ;;  %v2097_v21 = vmul.f32 -1.442695, %v1683_v9 }
 0x3f1   : > { %v2516_v16 = vpop.eup %2515  ;;  %2519 = vrcp.f32 %v1832_v12  ;;  %v1833_v17 = vadd.f32 1.0, %v2514_v14  ;;  %v2095_v22 = vmul.f32 -1.442695, %v1675_v13 }
 0x3f2   : > { %2521 = vrcp.f32 %v1830_v15  ;;  %v1831_v19 = vadd.f32 1.0, %v2516_v16 }
 0x3f3   : > { %2523 = vrcp.f32 %v1833_v17 }
 0x3f4   : > { %2525 = vrcp.f32 %v1831_v19 }
 0x3f5   : > { %2527 = vpow2.f32 %v2094_v18 }
 0x3f6   : > { %2529 = vpow2.f32 %v2097_v21 }
 0x3f7   : > { %2531 = vpow2.f32 %v2095_v22 }
 0x3fa   : > { %v2518_v23 = vpop.eup %2517 }
 0x3fb   : > { %v2520_v24 = vpop.eup %2519  ;;  %v1836_v25 = vadd.f32 1.0, %v2518_v23  ;;  %v2358_v26 = vpop.f32.mrb[88].mxu1 }
 0x3fc   : > { %v2522_v27 = vpop.eup %2521  ;;  %1928 = vst [vmem:[%s2989_s29 + $0x90] sm:$0xff] %v2520_v24  ;;  %v1696_v34 = vadd.f32 %v2358_v26, %v2975_v20  ;;  %v1687_v28 = vpop.f32.mrb[89].mxu1 }
 0x3fd   : > { %v2524_v29 = vpop.eup %2523  ;;  %1926 = vst [vmem:[%s2989_s29 + $0x80] sm:$0xff] %v2522_v27  ;;  %2533 = vrcp.f32 %v1836_v25  ;;  %v1688_v30 = vadd.f32 %v2975_v20, %v1687_v28  ;;  %v2359_v31 = vpop.f32.mrb[90].mxu1 }
 0x3fe   : > { %v2526_v32 = vpop.eup %2525  ;;  %1929 = vst [vmem:[%s2989_s29 + $0x98] sm:$0xff] %v2524_v29  ;;  %v2100_v33 = vmul.f32 -1.442695, %v1696_v34  ;;  %v1699_v35 = vadd.f32 %v2359_v31, %v2975_v20  ;;  %v1690_v50 = vpop.f32.mrb[91].mxu1 }
 0x3ff   : > { %v2528_v36 = vpop.eup %2527  ;;  %1927 = vst [vmem:[%s2989_s29 + $0x88] sm:$0xff] %v2526_v32  ;;  %v2098_v37 = vmul.f32 -1.442695, %v1688_v30  ;;  %v1691_v51 = vadd.f32 %v2975_v20, %v1690_v50 }
 0x400   : > { %v2530_v38 = vpop.eup %2529  ;;  %v1834_v39 = vadd.f32 1.0, %v2528_v36  ;;  %2535 = vpow2.f32 %v2100_v33  ;;  %v2101_v41 = vmul.f32 -1.442695, %v1699_v35 }
 0x401   : > { %v2532_v42 = vpop.eup %2531  ;;  %v1837_v43 = vadd.f32 1.0, %v2530_v38  ;;  %2537 = vpow2.f32 %v2098_v37  ;;  %v2099_v45 = vmul.f32 -1.442695, %v1691_v51 }
 0x402   : > { %2539 = vrcp.f32 %v1834_v39  ;;  %v1835_v44 = vadd.f32 1.0, %v2532_v42 }
 0x403   : > { %2541 = vrcp.f32 %v1837_v43 }
 0x404   : > { %2543 = vrcp.f32 %v1835_v44 }
 0x405   : > { %2545 = vpow2.f32 %v2101_v41 }
 0x406   : > { %2547 = vpow2.f32 %v2099_v45 }
 0x407   : > { %v2534_v46 = vpop.eup %2533 }
 0x408   : > { %1932 = vst [vmem:[%s2989_s29 + $0xb0] sm:$0xff] %v2534_v46 }
 0x40a   : > { %v2536_v47 = vpop.eup %2535 }
 0x40b   : > { %v2538_v48 = vpop.eup %2537  ;;  %v1840_v49 = vadd.f32 1.0, %v2536_v47  ;;  %v2362_v52 = vpop.f32.mrb[92].mxu1 }
 0x40c   : > { %v2540_v53 = vpop.eup %2539  ;;  %v1838_v54 = vadd.f32 1.0, %v2538_v48  ;;  %v1712_v55 = vadd.f32 %v2362_v52, %v2975_v20  ;;  %v1703_v40 = vpop.f32.mrb[93].mxu1 }
 0x40d   : > { %v2542_v56 = vpop.eup %2541  ;;  %1930 = vst [vmem:[%s2989_s29 + $0xa0] sm:$0xff] %v2540_v53  ;;  %2549 = vrcp.f32 %v1840_v49  ;;  %v1704_v57 = vadd.f32 %v2975_v20, %v1703_v40  ;;  %v2363_v58 = vpop.f32.mrb[94].mxu1 }
 0x40e   : > { %v2544_v59 = vpop.eup %2543  ;;  %1933 = vst [vmem:[%s2989_s29 + $0xb8] sm:$0xff] %v2542_v56  ;;  %2551 = vrcp.f32 %v1838_v54  ;;  %v2104_v60 = vmul.f32 -1.442695, %v1712_v55  ;;  %v1715_v61 = vadd.f32 %v2363_v58, %v2975_v20  ;;  %v1706_v62 = vpop.f32.mrb[95].mxu1 }
 0x40f   : > { %v2546_v63 = vpop.eup %2545  ;;  %1931 = vst [vmem:[%s2989_s29 + $0xa8] sm:$0xff] %v2544_v59  ;;  %v2102_v0 = vmul.f32 -1.442695, %v1704_v57  ;;  %v1707_v1 = vadd.f32 %v2975_v20, %v1706_v62 }
 0x410   : > { %v2548_v2 = vpop.eup %2547  ;;  %v1841_v3 = vadd.f32 1.0, %v2546_v63  ;;  %2553 = vpow2.f32 %v2104_v60  ;;  %v2105_v4 = vmul.f32 -1.442695, %v1715_v61 }
 0x411   : > { %v1839_v5 = vadd.f32 1.0, %v2548_v2  ;;  %2555 = vpow2.f32 %v2102_v0  ;;  %v2103_v6 = vmul.f32 -1.442695, %v1707_v1 }
 0x412   : > { %2557 = vrcp.f32 %v1841_v3 }
 0x413   : > { %2559 = vrcp.f32 %v1839_v5 }
 0x414   : > { %2561 = vpow2.f32 %v2105_v4 }
 0x415   : > { %2563 = vpow2.f32 %v2103_v6 }
 0x417   : > { %v2550_v7 = vpop.eup %2549 }
 0x418   : > { %v2552_v8 = vpop.eup %2551  ;;  %1936 = vst [vmem:[%s2989_s29 + $0xd0] sm:$0xff] %v2550_v7 }
 0x419   : > { %1934 = vst [vmem:[%s2989_s29 + $0xc0] sm:$0xff] %v2552_v8 }
 0x41a   : > { %v2554_v9 = vpop.eup %2553 }
 0x41b   : > { %v2556_v10 = vpop.eup %2555  ;;  %v1844_v20 = vadd.f32 1.0, %v2554_v9 }
 0x41c   : > { %v2558_v11 = vpop.eup %2557  ;;  %v1842_v12 = vadd.f32 1.0, %v2556_v10 }
 0x41d   : > { %v2560_v13 = vpop.eup %2559  ;;  %1937 = vst [vmem:[%s2989_s29 + $0xd8] sm:$0xff] %v2558_v11  ;;  %2565 = vrcp.f32 %v1844_v20 }
 0x41e   : > { %v2562_v14 = vpop.eup %2561  ;;  %1935 = vst [vmem:[%s2989_s29 + $0xc8] sm:$0xff] %v2560_v13  ;;  %2567 = vrcp.f32 %v1842_v12 }
 0x41f   : > { %v2564_v15 = vpop.eup %2563  ;;  %v1845_v16 = vadd.f32 1.0, %v2562_v14 }
 0x420   : > { %v1843_v17 = vadd.f32 1.0, %v2564_v15 }
 0x421   : > { %2569 = vrcp.f32 %v1845_v16 }
 0x422   : > { %2571 = vrcp.f32 %v1843_v17 }
 0x427   : > { %v2566_v18 = vpop.eup %2565 }
 0x428   : > { %v2568_v19 = vpop.eup %2567  ;;  %1940 = vst [vmem:[%s2989_s29 + $0xf0] sm:$0xff] %v2566_v18 }
 0x429   : > { %1938 = vst [vmem:[%s2989_s29 + $0xe0] sm:$0xff] %v2568_v19 }
 0x42b   : > { %v2570_v21 = vpop.eup %2569 }
 0x42c   : > { %v2572_v22 = vpop.eup %2571  ;;  %1941 = vst [vmem:[%s2989_s29 + $0xf8] sm:$0xff] %v2570_v21 }
 0x42d   : > { %1939 = vst [vmem:[%s2989_s29 + $0xe8] sm:$0xff] %v2572_v22 }
 0x42e PF: > { %s19_s30 = sadd.s32 1, %s2579_s30  }
 0x42f   : > { %p16_p4 = scmp.ge.s32.totalorder %s19_s30, 4  }
 0x431   :  { %18 = sbr.rel (!%p16_p4) target bundleno = 1 (0x1), region = 86 }

</bundles_post_ra>
